<compile_context>
chip_gen: v5e
topology: v5e:2x2
jax: 0.10.0
libtpu: 0.0.40
codegen_flags: <defaults>
</compile_context>

<pallas_src>
import jax
import jax.numpy as jnp
from jax import lax
from jax.experimental import pallas as pl
from jax.experimental.pallas import tpu as pltpu

# ----------------- small synthetic BERT config (same graph as the real one) -----------------
VOCAB = 100
HIDDEN = 32
N_HEADS = 4
HEAD_DIM = HIDDEN // N_HEADS
N_LAYERS = 2
INTERMEDIATE = 64
MAX_POS = 16
TYPE_VOCAB = 2
N_CLASSES = 3
CLS_PAD = 128            # lane-dense classifier output width (real logits = first N_CLASSES)
LN_EPS = 1e-12
_SQRT_HALF = 0.7071067811865476

# ----------------- packed parameter-slab layout (shared by packer and kernel) ----------------
# bf16 matmul-weight slab: (N_LAYERS + 1, W_ROWS, W_COLS); slot N_LAYERS = pooler/classifier.
WR_QKV = 0                          # rows [0,   D)     cols [0, 3D)  fused Wq|Wk|Wv
WR_WO = HIDDEN                      # rows [D,  2D)     cols [0, D)   attention output proj
WR_W1 = 2 * HIDDEN                  # rows [2D, 3D)     cols [0, I)   FFN up
WR_W2 = 3 * HIDDEN                  # rows [3D, 3D+I)   cols [0, D)   FFN down
W_ROWS = 3 * HIDDEN + INTERMEDIATE  # 160
W_COLS = max(3 * HIDDEN, CLS_PAD)   # 128
WR_POOL = 0                         # head slot: pooler  rows [0, D)  cols [0, D)
WR_CLS = HIDDEN                     # head slot: classifier rows [D, 2D) cols [0, CLS_PAD)

# f32 bias / LayerNorm slab: (N_LAYERS + 1, 1, P_COLS)
PO_BQKV = 0
PO_BO = PO_BQKV + 3 * HIDDEN
PO_LN1G = PO_BO + HIDDEN
PO_LN1B = PO_LN1G + HIDDEN
PO_B1 = PO_LN1B + HIDDEN
PO_B2 = PO_B1 + INTERMEDIATE
PO_LN2G = PO_B2 + HIDDEN
PO_LN2B = PO_LN2G + HIDDEN
P_COLS = PO_LN2B + HIDDEN           # 352
PO_EMB_G = 0                        # head slot: embedding LN gamma
PO_EMB_B = HIDDEN                   # head slot: embedding LN beta
PO_POOL_B = 2 * HIDDEN              # head slot: pooler bias
PO_CLS_B = 3 * HIDDEN               # head slot: classifier bias (padded to CLS_PAD)
assert P_COLS >= PO_CLS_B + CLS_PAD


# ----------------------------------- kernel helpers (pure value math) -------------------------
def _ln(x, g, b):
    mu = jnp.mean(x, axis=-1, keepdims=True)
    var = jnp.mean((x - mu) ** 2, axis=-1, keepdims=True)
    return (x - mu) * lax.rsqrt(var + LN_EPS) * g + b


def _gelu(x):  # exact (erf) gelu, matches BERT / torch default
    return 0.5 * x * (1.0 + lax.erf(x * _SQRT_HALF))


def _mm(x, w_bf16):
    """f32 activations x bf16 weights -> f32 accumulation on the MXU."""
    return jnp.dot(x.astype(jnp.bfloat16), w_bf16, preferred_element_type=jnp.float32)


# ----------------------------------- fused forward kernel -------------------------------------
def _make_kernel(BB, S):
    """Kernel processing one batch block of BB samples (T = BB*S packed tokens)."""
    T = BB * S
    D, I, H, Dh, NL = HIDDEN, INTERMEDIATE, N_HEADS, HEAD_DIM, N_LAYERS
    scale = 1.0 / float(Dh) ** 0.5

    def kernel(ids_ref, mask_ref, tbl_ref, w_ref, p_ref, o_ref, emb_ref):
        # --- small helper: (1, width) f32 slice out of the packed bias/LN slab ---------------
        def pvec(idx, off, width):
            return p_ref[idx, :, off:off + width]

        # --------------- in-kernel embedding: token gather + (pos + type0) add ---------------
        # TODO(synk): token_type embedding hard-coded to type 0 (matches token_type_ids == 0).
        base = pl.program_id(0) * T
        for r in range(T):
            s = r % S                                        # position within the sample
            tok = ids_ref[base + r]                          # SMEM scalar token id
            emb_ref[pl.ds(r, 1), :] = tbl_ref[tok] + tbl_ref[VOCAB + s]
        h = _ln(emb_ref[...], pvec(NL, PO_EMB_G, D), pvec(NL, PO_EMB_B, D))

        # --------------- additive attention bias (block-diagonal over packed samples) --------
        key_pieces = [jnp.where(mask_ref[i:i + 1, :] > 0, 0.0, -10000.0).astype(jnp.float32)
                      for i in range(BB)]
        key_bias = key_pieces[0] if BB == 1 else jnp.concatenate(key_pieces, axis=1)  # (1, T)
        if BB == 1:
            bias = key_bias                                   # (1, S), broadcasts over scores
        else:
            row_id = lax.broadcasted_iota(jnp.int32, (T, T), 0) // S
            col_id = lax.broadcasted_iota(jnp.int32, (T, T), 1) // S
            bias = jnp.where(row_id == col_id, key_bias, jnp.float32(-10000.0))       # (T, T)

        for l in range(NL):
            # ---------------- attention block ----------------
            resid = h
            wqkv = w_ref[l, WR_QKV:WR_QKV + D, 0:3 * D]                   # (D, 3D) bf16
            qkv = _mm(h, wqkv) + pvec(l, PO_BQKV, 3 * D)                  # (T, 3D) f32
            qkv16 = qkv.astype(jnp.bfloat16)                              # single cast

            # per-head scores, max-shifted; exp / sum / reciprocal batched across heads
            shifted = []
            for hh in range(H):
                q_h = qkv16[:, hh * Dh:(hh + 1) * Dh]
                k_h = qkv16[:, D + hh * Dh:D + (hh + 1) * Dh]
                s_h = lax.dot_general(q_h, k_h, (((1,), (1,)), ((), ())),
                                      preferred_element_type=jnp.float32) * scale + bias
                shifted.append(s_h - jnp.max(s_h, axis=-1, keepdims=True))
            p_all = jnp.exp(jnp.concatenate(shifted, axis=0))             # (H*T, T): ONE exp
            p_all = p_all * pl.reciprocal(                                # ONE reciprocal (EUP)
                jnp.sum(p_all, axis=-1, keepdims=True), approx=True)

            # per-head context, merged into one (T, D) buffer -> ONE output-projection matmul
            ctx_parts = []
            for hh in range(H):
                p_h = p_all[hh * T:(hh + 1) * T, :].astype(jnp.bfloat16)  # f32-aligned slice
                v_h = qkv16[:, 2 * D + hh * Dh:2 * D + (hh + 1) * Dh]
                ctx_parts.append(jnp.dot(p_h, v_h, preferred_element_type=jnp.float32))
            ctx = jnp.concatenate(ctx_parts, axis=-1).astype(jnp.bfloat16)  # (T, D), one cast
            wo = w_ref[l, WR_WO:WR_WO + D, 0:D]                              # (D, D) bf16
            attn = jnp.dot(ctx, wo, preferred_element_type=jnp.float32) + pvec(l, PO_BO, D)
            h = _ln(attn + resid, pvec(l, PO_LN1G, D), pvec(l, PO_LN1B, D))

            # ---------------- feed-forward block ----------------
            resid = h
            w1 = w_ref[l, WR_W1:WR_W1 + D, 0:I]
            w2 = w_ref[l, WR_W2:WR_W2 + I, 0:D]
            ff = _gelu(_mm(h, w1) + pvec(l, PO_B1, I))
            ff = _mm(ff, w2) + pvec(l, PO_B2, D)
            h = _ln(ff + resid, pvec(l, PO_LN2G, D), pvec(l, PO_LN2B, D))

        # ------------- pooler (tanh on CLS) + classifier, lane-dense (BB, 128) store ---------
        if BB == 1:
            cls_tok = h[0:1, :]
        else:
            cls_tok = jnp.concatenate([h[bb * S:bb * S + 1, :] for bb in range(BB)], axis=0)
        pool_w = w_ref[NL, WR_POOL:WR_POOL + D, 0:D]
        pooled = jnp.tanh(_mm(cls_tok, pool_w) + pvec(NL, PO_POOL_B, D))
        # TODO(synk): nn.Dropout(p=0.3) is identity in eval mode; train-mode RNG dropout not done.
        cls_w = w_ref[NL, WR_CLS:WR_CLS + D, 0:CLS_PAD]
        o_ref[...] = _mm(pooled, cls_w) + pvec(NL, PO_CLS_B, CLS_PAD)

    return kernel


# ----------------------------------- parameters -----------------------------------------------
def init_params(key):
    keys = jax.random.split(key, 8 + N_LAYERS * 12)
    it = iter(keys)

    def nrm(shape):
        return 0.02 * jax.random.normal(next(it), shape, dtype=jnp.float32)

    raw = {
        "word_emb": nrm((VOCAB, HIDDEN)),
        "pos_emb": nrm((MAX_POS, HIDDEN)),
        "type_emb": nrm((TYPE_VOCAB, HIDDEN)),
        "emb_ln_g": jnp.ones((HIDDEN,), jnp.float32),
        "emb_ln_b": jnp.zeros((HIDDEN,), jnp.float32),
        "pool_w": nrm((HIDDEN, HIDDEN)),
        "pool_b": jnp.zeros((HIDDEN,), jnp.float32),
        "cls_w": nrm((HIDDEN, N_CLASSES)),
        "cls_b": jnp.zeros((N_CLASSES,), jnp.float32),
        "layers": [],
    }
    for _ in range(N_LAYERS):
        raw["layers"].append({
            "wq": nrm((HIDDEN, HIDDEN)), "bq": jnp.zeros((HIDDEN,), jnp.float32),
            "wk": nrm((HIDDEN, HIDDEN)), "bk": jnp.zeros((HIDDEN,), jnp.float32),
            "wv": nrm((HIDDEN, HIDDEN)), "bv": jnp.zeros((HIDDEN,), jnp.float32),
            "wo": nrm((HIDDEN, HIDDEN)), "bo": jnp.zeros((HIDDEN,), jnp.float32),
            "ln1_g": jnp.ones((HIDDEN,), jnp.float32),
            "ln1_b": jnp.zeros((HIDDEN,), jnp.float32),
            "w1": nrm((HIDDEN, INTERMEDIATE)), "b1": jnp.zeros((INTERMEDIATE,), jnp.float32),
            "w2": nrm((INTERMEDIATE, HIDDEN)), "b2": jnp.zeros((HIDDEN,), jnp.float32),
            "ln2_g": jnp.ones((HIDDEN,), jnp.float32),
            "ln2_b": jnp.zeros((HIDDEN,), jnp.float32),
        })
    return pack_params(raw)


def pack_params(raw):
    """Pack ALL parameters into 3 slabs: bf16 matmul weights, f32 biases/LN, f32 emb table.

    Note: matmul weights are permanently cast to bf16 (f32 MXU accumulation) -> small numeric
    divergence vs. a torch f32 reference is expected/intentional.
    """
    D, I, NL = HIDDEN, INTERMEDIATE, N_LAYERS
    w_slab = jnp.zeros((NL + 1, W_ROWS, W_COLS), jnp.float32)
    p_slab = jnp.zeros((NL + 1, 1, P_COLS), jnp.float32)

    for l, lp in enumerate(raw["layers"]):
        wqkv = jnp.concatenate([lp["wq"], lp["wk"], lp["wv"]], axis=1)           # (D, 3D)
        w_slab = w_slab.at[l, WR_QKV:WR_QKV + D, 0:3 * D].set(wqkv)
        w_slab = w_slab.at[l, WR_WO:WR_WO + D, 0:D].set(lp["wo"])
        w_slab = w_slab.at[l, WR_W1:WR_W1 + D, 0:I].set(lp["w1"])
        w_slab = w_slab.at[l, WR_W2:WR_W2 + I, 0:D].set(lp["w2"])
        prow = jnp.concatenate([lp["bq"], lp["bk"], lp["bv"], lp["bo"],
                                lp["ln1_g"], lp["ln1_b"], lp["b1"], lp["b2"],
                                lp["ln2_g"], lp["ln2_b"]])                        # (P_COLS,)
        p_slab = p_slab.at[l, 0, :].set(prow)

    # head slot: pooler + classifier (classifier lane-padded to CLS_PAD for a dense store)
    w_slab = w_slab.at[NL, WR_POOL:WR_POOL + D, 0:D].set(raw["pool_w"])
    w_slab = w_slab.at[NL, WR_CLS:WR_CLS + D, 0:N_CLASSES].set(raw["cls_w"])
    cls_b_pad = jnp.zeros((CLS_PAD,), jnp.float32).at[:N_CLASSES].set(raw["cls_b"])
    head_row = jnp.concatenate([raw["emb_ln_g"], raw["emb_ln_b"], raw["pool_b"], cls_b_pad])
    p_slab = p_slab.at[NL, 0, 0:PO_CLS_B + CLS_PAD].set(head_row)

    # embedding table: word rows, then (pos + type0) rows, shaped (V+MAX_POS, 1, D) so the
    # in-kernel gather is a dynamic index on an untiled leading dim.
    pos_type = raw["pos_emb"] + raw["type_emb"][0][None, :]
    emb_tbl = jnp.concatenate([raw["word_emb"], pos_type], axis=0)[:, None, :]

    return {"emb_tbl": emb_tbl,
            "w_slab": w_slab.astype(jnp.bfloat16),
            "p_slab": p_slab}


# ----------------------------------- forward pass ---------------------------------------------
def bert_sentiment_forward(params, input_ids, attention_mask):
    B, S = input_ids.shape
    assert S <= MAX_POS, "sequence length exceeds the position-embedding table"

    # Grid policy: keep 2 parallel steps when possible so both v7x TensorCores get work;
    # each step packs B/2 samples into the sublane dim (block-diagonal attention), which
    # also densifies vregs / halves grid overhead on v5e/v6e when B >= 4.
    grid_steps = 2 if (B >= 2 and B % 2 == 0) else B
    BB = B // grid_steps

    ids_flat = input_ids.astype(jnp.int32).reshape(-1)                      # SMEM scalar prefetch
    mask = attention_mask.astype(jnp.int32).reshape(grid_steps, BB, S)

    emb_tbl, w_slab, p_slab = params["emb_tbl"], params["w_slab"], params["p_slab"]
    kernel = _make_kernel(BB, S)

    const3 = lambda g, ids: (0, 0, 0)   # constant index -> slab stays VMEM-resident across grid
    grid_spec = pltpu.PrefetchScalarGridSpec(
        num_scalar_prefetch=1,
        grid=(grid_steps,),
        in_specs=[
            pl.BlockSpec((pl.Squeezed(), BB, S), lambda g, ids: (g, 0, 0)),               # mask
            pl.BlockSpec(emb_tbl.shape, const3, pipeline_mode=pl.Buffered(1)),            # emb table
            pl.BlockSpec(w_slab.shape, const3, pipeline_mode=pl.Buffered(1)),             # bf16 weights
            pl.BlockSpec(p_slab.shape, const3, pipeline_mode=pl.Buffered(1)),             # f32 biases/LN
        ],
        out_specs=pl.BlockSpec((pl.Squeezed(), BB, CLS_PAD), lambda g, ids: (g, 0, 0)),
        scratch_shapes=[pltpu.VMEM((BB * S, HIDDEN), jnp.float32)],                       # emb buffer
    )

    out = pl.pallas_call(
        kernel,
        out_shape=jax.ShapeDtypeStruct((grid_steps, BB, CLS_PAD), jnp.float32),
        grid_spec=grid_spec,
        compiler_params=pltpu.CompilerParams(dimension_semantics=("parallel",)),
    )(ids_flat, mask, emb_tbl, w_slab, p_slab)

    return out.reshape(B, CLS_PAD)[:, :N_CLASSES]


# ----------------------------------- main ------------------------------------------------------
if __name__ == "__main__":
    key = jax.random.PRNGKey(0)
    k_ids, k_params = jax.random.split(key)

    B, S = 2, 8
    input_ids = jax.random.randint(k_ids, (B, S), 0, VOCAB, dtype=jnp.int32)
    attention_mask = jnp.array(
        [[1, 1, 1, 1, 1, 1, 1, 1],
         [1, 1, 1, 1, 1, 0, 0, 0]], dtype=jnp.int32)

    params = init_params(k_params)
    fwd = jax.jit(bert_sentiment_forward)
    logits = fwd(params, input_ids, attention_mask)
    jax.block_until_ready(logits)

    assert logits.shape == (B, N_CLASSES) and logits.dtype == jnp.float32
    assert bool(jnp.all(jnp.isfinite(logits)))
    print("KERNEL_OK")
</pallas_src>

<mosaic_0001>
module attributes {stable_mosaic.version = 11 : i64} {
  func.func @kernel(%arg0: i32, %arg1: memref<16xi32, #tpu.memory_space<smem>>, %arg2: memref<1x1x8xi32, #tpu.memory_space<vmem>>, %arg3: memref<116x1x32xf32, #tpu.memory_space<vmem>>, %arg4: memref<3x160x128xbf16, #tpu.memory_space<vmem>>, %arg5: memref<3x1x352xf32, #tpu.memory_space<vmem>>, %arg6: memref<1x1x128xf32, #tpu.memory_space<vmem>>, %arg7: memref<8x32xf32, #tpu.memory_space<vmem>>) attributes {dimension_semantics = [#tpu.dimension_semantics<parallel>], iteration_bounds = array<i64: 2>, scalar_prefetch = 1 : i64, scratch_operands = 1 : i64, tpu.core_type = #tpu.core_type<tc>, window_params = [{transform_indices = @transform_0, window_bounds = array<i64: 1, 1, 8>}, {pipeline_mode = #tpu.pipeline_mode<synchronous>, transform_indices = @transform_1, window_bounds = array<i64: 116, 1, 32>}, {pipeline_mode = #tpu.pipeline_mode<synchronous>, transform_indices = @transform_2, window_bounds = array<i64: 3, 160, 128>}, {pipeline_mode = #tpu.pipeline_mode<synchronous>, transform_indices = @transform_3, window_bounds = array<i64: 3, 1, 352>}, {transform_indices = @transform_4, window_bounds = array<i64: 1, 1, 128>}]} {
    %c8_i32 = arith.constant 8 : i32
    %0 = arith.muli %arg0, %c8_i32 : i32
    %c0_i32 = arith.constant 0 : i32
    %1 = arith.addi %0, %c0_i32 : i32
    %2 = arith.index_cast %1 : i32 to index
    %3 = memref.load %arg1[%2] : memref<16xi32, #tpu.memory_space<smem>>
    %4 = arith.index_cast %3 : i32 to index
    %c0 = arith.constant 0 : index
    %c0_0 = arith.constant 0 : index
    %5 = vector.load %arg3[%4, %c0, %c0_0] : memref<116x1x32xf32, #tpu.memory_space<vmem>>, vector<1x1x32xf32>
    %6 = vector.shape_cast %5 : vector<1x1x32xf32> to vector<1x32xf32>
    %c100 = arith.constant 100 : index
    %c0_1 = arith.constant 0 : index
    %c0_2 = arith.constant 0 : index
    %7 = vector.load %arg3[%c100, %c0_1, %c0_2] : memref<116x1x32xf32, #tpu.memory_space<vmem>>, vector<1x1x32xf32>
    %8 = vector.shape_cast %7 : vector<1x1x32xf32> to vector<1x32xf32>
    %9 = arith.addf %6, %8 : vector<1x32xf32>
    %c0_3 = arith.constant 0 : index
    %c0_4 = arith.constant 0 : index
    %10 = vector.load %arg7[%c0_3, %c0_4] : memref<8x32xf32, #tpu.memory_space<vmem>>, vector<1x32xf32>
    tpu.vector_store %arg7[%c0_3, %c0_4], %9 {strides = array<i32>} : memref<8x32xf32, #tpu.memory_space<vmem>>, vector<1x32xf32>,
    %c1_i32 = arith.constant 1 : i32
    %11 = arith.addi %0, %c1_i32 : i32
    %12 = arith.index_cast %11 : i32 to index
    %13 = memref.load %arg1[%12] : memref<16xi32, #tpu.memory_space<smem>>
    %14 = arith.index_cast %13 : i32 to index
    %c0_5 = arith.constant 0 : index
    %c0_6 = arith.constant 0 : index
    %15 = vector.load %arg3[%14, %c0_5, %c0_6] : memref<116x1x32xf32, #tpu.memory_space<vmem>>, vector<1x1x32xf32>
    %16 = vector.shape_cast %15 : vector<1x1x32xf32> to vector<1x32xf32>
    %c101 = arith.constant 101 : index
    %c0_7 = arith.constant 0 : index
    %c0_8 = arith.constant 0 : index
    %17 = vector.load %arg3[%c101, %c0_7, %c0_8] : memref<116x1x32xf32, #tpu.memory_space<vmem>>, vector<1x1x32xf32>
    %18 = vector.shape_cast %17 : vector<1x1x32xf32> to vector<1x32xf32>
    %19 = arith.addf %16, %18 : vector<1x32xf32>
    %c1 = arith.constant 1 : index
    %c0_9 = arith.constant 0 : index
    %20 = vector.load %arg7[%c1, %c0_9] : memref<8x32xf32, #tpu.memory_space<vmem>>, vector<1x32xf32>
    tpu.vector_store %arg7[%c1, %c0_9], %19 {strides = array<i32>} : memref<8x32xf32, #tpu.memory_space<vmem>>, vector<1x32xf32>,
    %c2_i32 = arith.constant 2 : i32
    %21 = arith.addi %0, %c2_i32 : i32
    %22 = arith.index_cast %21 : i32 to index
    %23 = memref.load %arg1[%22] : memref<16xi32, #tpu.memory_space<smem>>
    %24 = arith.index_cast %23 : i32 to index
    %c0_10 = arith.constant 0 : index
    %c0_11 = arith.constant 0 : index
    %25 = vector.load %arg3[%24, %c0_10, %c0_11] : memref<116x1x32xf32, #tpu.memory_space<vmem>>, vector<1x1x32xf32>
    %26 = vector.shape_cast %25 : vector<1x1x32xf32> to vector<1x32xf32>
    %c102 = arith.constant 102 : index
    %c0_12 = arith.constant 0 : index
    %c0_13 = arith.constant 0 : index
    %27 = vector.load %arg3[%c102, %c0_12, %c0_13] : memref<116x1x32xf32, #tpu.memory_space<vmem>>, vector<1x1x32xf32>
    %28 = vector.shape_cast %27 : vector<1x1x32xf32> to vector<1x32xf32>
    %29 = arith.addf %26, %28 : vector<1x32xf32>
    %c2 = arith.constant 2 : index
    %c0_14 = arith.constant 0 : index
    %30 = vector.load %arg7[%c2, %c0_14] : memref<8x32xf32, #tpu.memory_space<vmem>>, vector<1x32xf32>
    tpu.vector_store %arg7[%c2, %c0_14], %29 {strides = array<i32>} : memref<8x32xf32, #tpu.memory_space<vmem>>, vector<1x32xf32>,
    %c3_i32 = arith.constant 3 : i32
    %31 = arith.addi %0, %c3_i32 : i32
    %32 = arith.index_cast %31 : i32 to index
    %33 = memref.load %arg1[%32] : memref<16xi32, #tpu.memory_space<smem>>
    %34 = arith.index_cast %33 : i32 to index
    %c0_15 = arith.constant 0 : index
    %c0_16 = arith.constant 0 : index
    %35 = vector.load %arg3[%34, %c0_15, %c0_16] : memref<116x1x32xf32, #tpu.memory_space<vmem>>, vector<1x1x32xf32>
    %36 = vector.shape_cast %35 : vector<1x1x32xf32> to vector<1x32xf32>
    %c103 = arith.constant 103 : index
    %c0_17 = arith.constant 0 : index
    %c0_18 = arith.constant 0 : index
    %37 = vector.load %arg3[%c103, %c0_17, %c0_18] : memref<116x1x32xf32, #tpu.memory_space<vmem>>, vector<1x1x32xf32>
    %38 = vector.shape_cast %37 : vector<1x1x32xf32> to vector<1x32xf32>
    %39 = arith.addf %36, %38 : vector<1x32xf32>
    %c3 = arith.constant 3 : index
    %c0_19 = arith.constant 0 : index
    %40 = vector.load %arg7[%c3, %c0_19] : memref<8x32xf32, #tpu.memory_space<vmem>>, vector<1x32xf32>
    tpu.vector_store %arg7[%c3, %c0_19], %39 {strides = array<i32>} : memref<8x32xf32, #tpu.memory_space<vmem>>, vector<1x32xf32>,
    %c4_i32 = arith.constant 4 : i32
    %41 = arith.addi %0, %c4_i32 : i32
    %42 = arith.index_cast %41 : i32 to index
    %43 = memref.load %arg1[%42] : memref<16xi32, #tpu.memory_space<smem>>
    %44 = arith.index_cast %43 : i32 to index
    %c0_20 = arith.constant 0 : index
    %c0_21 = arith.constant 0 : index
    %45 = vector.load %arg3[%44, %c0_20, %c0_21] : memref<116x1x32xf32, #tpu.memory_space<vmem>>, vector<1x1x32xf32>
    %46 = vector.shape_cast %45 : vector<1x1x32xf32> to vector<1x32xf32>
    %c104 = arith.constant 104 : index
    %c0_22 = arith.constant 0 : index
    %c0_23 = arith.constant 0 : index
    %47 = vector.load %arg3[%c104, %c0_22, %c0_23] : memref<116x1x32xf32, #tpu.memory_space<vmem>>, vector<1x1x32xf32>
    %48 = vector.shape_cast %47 : vector<1x1x32xf32> to vector<1x32xf32>
    %49 = arith.addf %46, %48 : vector<1x32xf32>
    %c4 = arith.constant 4 : index
    %c0_24 = arith.constant 0 : index
    %50 = vector.load %arg7[%c4, %c0_24] : memref<8x32xf32, #tpu.memory_space<vmem>>, vector<1x32xf32>
    tpu.vector_store %arg7[%c4, %c0_24], %49 {strides = array<i32>} : memref<8x32xf32, #tpu.memory_space<vmem>>, vector<1x32xf32>,
    %c5_i32 = arith.constant 5 : i32
    %51 = arith.addi %0, %c5_i32 : i32
    %52 = arith.index_cast %51 : i32 to index
    %53 = memref.load %arg1[%52] : memref<16xi32, #tpu.memory_space<smem>>
    %54 = arith.index_cast %53 : i32 to index
    %c0_25 = arith.constant 0 : index
    %c0_26 = arith.constant 0 : index
    %55 = vector.load %arg3[%54, %c0_25, %c0_26] : memref<116x1x32xf32, #tpu.memory_space<vmem>>, vector<1x1x32xf32>
    %56 = vector.shape_cast %55 : vector<1x1x32xf32> to vector<1x32xf32>
    %c105 = arith.constant 105 : index
    %c0_27 = arith.constant 0 : index
    %c0_28 = arith.constant 0 : index
    %57 = vector.load %arg3[%c105, %c0_27, %c0_28] : memref<116x1x32xf32, #tpu.memory_space<vmem>>, vector<1x1x32xf32>
    %58 = vector.shape_cast %57 : vector<1x1x32xf32> to vector<1x32xf32>
    %59 = arith.addf %56, %58 : vector<1x32xf32>
    %c5 = arith.constant 5 : index
    %c0_29 = arith.constant 0 : index
    %60 = vector.load %arg7[%c5, %c0_29] : memref<8x32xf32, #tpu.memory_space<vmem>>, vector<1x32xf32>
    tpu.vector_store %arg7[%c5, %c0_29], %59 {strides = array<i32>} : memref<8x32xf32, #tpu.memory_space<vmem>>, vector<1x32xf32>,
    %c6_i32 = arith.constant 6 : i32
    %61 = arith.addi %0, %c6_i32 : i32
    %62 = arith.index_cast %61 : i32 to index
    %63 = memref.load %arg1[%62] : memref<16xi32, #tpu.memory_space<smem>>
    %64 = arith.index_cast %63 : i32 to index
    %c0_30 = arith.constant 0 : index
    %c0_31 = arith.constant 0 : index
    %65 = vector.load %arg3[%64, %c0_30, %c0_31] : memref<116x1x32xf32, #tpu.memory_space<vmem>>, vector<1x1x32xf32>
    %66 = vector.shape_cast %65 : vector<1x1x32xf32> to vector<1x32xf32>
    %c106 = arith.constant 106 : index
    %c0_32 = arith.constant 0 : index
    %c0_33 = arith.constant 0 : index
    %67 = vector.load %arg3[%c106, %c0_32, %c0_33] : memref<116x1x32xf32, #tpu.memory_space<vmem>>, vector<1x1x32xf32>
    %68 = vector.shape_cast %67 : vector<1x1x32xf32> to vector<1x32xf32>
    %69 = arith.addf %66, %68 : vector<1x32xf32>
    %c6 = arith.constant 6 : index
    %c0_34 = arith.constant 0 : index
    %70 = vector.load %arg7[%c6, %c0_34] : memref<8x32xf32, #tpu.memory_space<vmem>>, vector<1x32xf32>
    tpu.vector_store %arg7[%c6, %c0_34], %69 {strides = array<i32>} : memref<8x32xf32, #tpu.memory_space<vmem>>, vector<1x32xf32>,
    %c7_i32 = arith.constant 7 : i32
    %71 = arith.addi %0, %c7_i32 : i32
    %72 = arith.index_cast %71 : i32 to index
    %73 = memref.load %arg1[%72] : memref<16xi32, #tpu.memory_space<smem>>
    %74 = arith.index_cast %73 : i32 to index
    %c0_35 = arith.constant 0 : index
    %c0_36 = arith.constant 0 : index
    %75 = vector.load %arg3[%74, %c0_35, %c0_36] : memref<116x1x32xf32, #tpu.memory_space<vmem>>, vector<1x1x32xf32>
    %76 = vector.shape_cast %75 : vector<1x1x32xf32> to vector<1x32xf32>
    %c107 = arith.constant 107 : index
    %c0_37 = arith.constant 0 : index
    %c0_38 = arith.constant 0 : index
    %77 = vector.load %arg3[%c107, %c0_37, %c0_38] : memref<116x1x32xf32, #tpu.memory_space<vmem>>, vector<1x1x32xf32>
    %78 = vector.shape_cast %77 : vector<1x1x32xf32> to vector<1x32xf32>
    %79 = arith.addf %76, %78 : vector<1x32xf32>
    %c7 = arith.constant 7 : index
    %c0_39 = arith.constant 0 : index
    %80 = vector.load %arg7[%c7, %c0_39] : memref<8x32xf32, #tpu.memory_space<vmem>>, vector<1x32xf32>
    tpu.vector_store %arg7[%c7, %c0_39], %79 {strides = array<i32>} : memref<8x32xf32, #tpu.memory_space<vmem>>, vector<1x32xf32>,
    %c0_40 = arith.constant 0 : index
    %c0_41 = arith.constant 0 : index
    %81 = vector.load %arg7[%c0_40, %c0_41] : memref<8x32xf32, #tpu.memory_space<vmem>>, vector<8x32xf32>
    %c2_42 = arith.constant 2 : index
    %c0_43 = arith.constant 0 : index
    %c0_44 = arith.constant 0 : index
    %82 = vector.load %arg5[%c2_42, %c0_43, %c0_44] : memref<3x1x352xf32, #tpu.memory_space<vmem>>, vector<1x1x32xf32>
    %83 = vector.shape_cast %82 : vector<1x1x32xf32> to vector<1x32xf32>
    %c2_45 = arith.constant 2 : index
    %c0_46 = arith.constant 0 : index
    %c32 = arith.constant 32 : index
    %84 = vector.load %arg5[%c2_45, %c0_46, %c32] : memref<3x1x352xf32, #tpu.memory_space<vmem>>, vector<1x1x32xf32>
    %85 = vector.shape_cast %84 : vector<1x1x32xf32> to vector<1x32xf32>
    %cst = arith.constant dense<0.000000e+00> : vector<8xf32>
    %86 = vector.multi_reduction <add>, %81, %cst [1] : vector<8x32xf32> to vector<8xf32>
    %87 = vector.shape_cast %86 : vector<8xf32> to vector<8x1xf32>
    %cst_47 = arith.constant 3.200000e+01 : f32
    %88 = vector.broadcast %cst_47 : f32 to vector<8x1xf32>
    %89 = arith.divf %87, %88 : vector<8x1xf32>
    %90 = vector.broadcast %89 : vector<8x1xf32> to vector<8x32xf32>
    %91 = arith.subf %81, %90 : vector<8x32xf32>
    %92 = arith.mulf %91, %91 : vector<8x32xf32>
    %cst_48 = arith.constant dense<0.000000e+00> : vector<8xf32>
    %93 = vector.multi_reduction <add>, %92, %cst_48 [1] : vector<8x32xf32> to vector<8xf32>
    %94 = vector.shape_cast %93 : vector<8xf32> to vector<8x1xf32>
    %cst_49 = arith.constant 3.200000e+01 : f32
    %95 = vector.broadcast %cst_49 : f32 to vector<8x1xf32>
    %96 = arith.divf %94, %95 : vector<8x1xf32>
    %97 = vector.broadcast %89 : vector<8x1xf32> to vector<8x32xf32>
    %98 = arith.subf %81, %97 : vector<8x32xf32>
    %cst_50 = arith.constant 9.99999996E-13 : f32
    %99 = vector.broadcast %cst_50 : f32 to vector<8x1xf32>
    %100 = arith.addf %96, %99 : vector<8x1xf32>
    %101 = math.rsqrt %100 : vector<8x1xf32>
    %102 = vector.broadcast %101 : vector<8x1xf32> to vector<8x32xf32>
    %103 = arith.mulf %98, %102 : vector<8x32xf32>
    %104 = vector.broadcast %83 : vector<1x32xf32> to vector<8x32xf32>
    %105 = arith.mulf %103, %104 : vector<8x32xf32>
    %106 = vector.broadcast %85 : vector<1x32xf32> to vector<8x32xf32>
    %107 = arith.addf %105, %106 : vector<8x32xf32>
    %c0_51 = arith.constant 0 : index
    %c0_52 = arith.constant 0 : index
    %c0_53 = arith.constant 0 : index
    %108 = vector.load %arg2[%c0_51, %c0_52, %c0_53] : memref<1x1x8xi32, #tpu.memory_space<vmem>>, vector<1x1x8xi32>
    %109 = vector.shape_cast %108 : vector<1x1x8xi32> to vector<1x8xi32>
    %c0_i32_54 = arith.constant 0 : i32
    %110 = vector.broadcast %c0_i32_54 : i32 to vector<1x8xi32>
    %111 = arith.cmpi sgt, %109, %110 : vector<1x8xi32>
    %cst_55 = arith.constant 0.000000e+00 : f32
    %cst_56 = arith.constant -1.000000e+04 : f32
    %112 = vector.broadcast %cst_55 : f32 to vector<1x8xf32>
    %113 = vector.broadcast %cst_56 : f32 to vector<1x8xf32>
    %114 = arith.select %111, %112, %113 : vector<1x8xi1>, vector<1x8xf32>
    %c0_57 = arith.constant 0 : index
    %c0_58 = arith.constant 0 : index
    %c0_59 = arith.constant 0 : index
    %115 = vector.load %arg4[%c0_57, %c0_58, %c0_59] : memref<3x160x128xbf16, #tpu.memory_space<vmem>>, vector<1x32x96xbf16>
    %116 = vector.shape_cast %115 : vector<1x32x96xbf16> to vector<32x96xbf16>
    %117 = arith.truncf %107 : vector<8x32xf32> to vector<8x32xbf16>
    %cst_60 = arith.constant dense<0.000000e+00> : vector<8x96xf32>
    %118 = tpu.matmul %117, %116, %cst_60 {dimension_numbers = #tpu.dot_dimension_numbers<[1], [0], [0], [1], [0, 0, 1, 1], [], []>} : vector<8x32xbf16>, vector<32x96xbf16>, vector<8x96xf32> -> vector<8x96xf32>
    %c0_61 = arith.constant 0 : index
    %c0_62 = arith.constant 0 : index
    %c0_63 = arith.constant 0 : index
    %119 = vector.load %arg5[%c0_61, %c0_62, %c0_63] : memref<3x1x352xf32, #tpu.memory_space<vmem>>, vector<1x1x96xf32>
    %120 = vector.shape_cast %119 : vector<1x1x96xf32> to vector<1x96xf32>
    %121 = vector.broadcast %120 : vector<1x96xf32> to vector<8x96xf32>
    %122 = arith.addf %118, %121 : vector<8x96xf32>
    %123 = arith.truncf %122 : vector<8x96xf32> to vector<8x96xbf16>
    %124 = vector.extract_strided_slice %123 {offsets = [0, 0], sizes = [8, 8], strides = [1, 1]} : vector<8x96xbf16> to vector<8x8xbf16>
    %125 = vector.extract_strided_slice %123 {offsets = [0, 32], sizes = [8, 8], strides = [1, 1]} : vector<8x96xbf16> to vector<8x8xbf16>
    %cst_64 = arith.constant dense<0.000000e+00> : vector<8x8xf32>
    %126 = tpu.matmul %124, %125, %cst_64 {dimension_numbers = #tpu.dot_dimension_numbers<[1], [1], [0], [0], [0, 0, 1, 0], [], []>} : vector<8x8xbf16>, vector<8x8xbf16>, vector<8x8xf32> -> vector<8x8xf32>
    %cst_65 = arith.constant 0.353553385 : f32
    %127 = vector.broadcast %cst_65 : f32 to vector<8x8xf32>
    %128 = arith.mulf %126, %127 : vector<8x8xf32>
    %129 = vector.broadcast %114 : vector<1x8xf32> to vector<8x8xf32>
    %130 = arith.addf %128, %129 : vector<8x8xf32>
    %cst_66 = arith.constant dense<0xFF800000> : vector<8xf32>
    %131 = vector.multi_reduction <maximumf>, %130, %cst_66 [1] : vector<8x8xf32> to vector<8xf32>
    %132 = vector.shape_cast %131 : vector<8xf32> to vector<8x1xf32>
    %133 = vector.broadcast %132 : vector<8x1xf32> to vector<8x8xf32>
    %134 = arith.subf %130, %133 : vector<8x8xf32>
    %135 = vector.extract_strided_slice %123 {offsets = [0, 8], sizes = [8, 8], strides = [1, 1]} : vector<8x96xbf16> to vector<8x8xbf16>
    %136 = vector.extract_strided_slice %123 {offsets = [0, 40], sizes = [8, 8], strides = [1, 1]} : vector<8x96xbf16> to vector<8x8xbf16>
    %cst_67 = arith.constant dense<0.000000e+00> : vector<8x8xf32>
    %137 = tpu.matmul %135, %136, %cst_67 {dimension_numbers = #tpu.dot_dimension_numbers<[1], [1], [0], [0], [0, 0, 1, 0], [], []>} : vector<8x8xbf16>, vector<8x8xbf16>, vector<8x8xf32> -> vector<8x8xf32>
    %cst_68 = arith.constant 0.353553385 : f32
    %138 = vector.broadcast %cst_68 : f32 to vector<8x8xf32>
    %139 = arith.mulf %137, %138 : vector<8x8xf32>
    %140 = vector.broadcast %114 : vector<1x8xf32> to vector<8x8xf32>
    %141 = arith.addf %139, %140 : vector<8x8xf32>
    %cst_69 = arith.constant dense<0xFF800000> : vector<8xf32>
    %142 = vector.multi_reduction <maximumf>, %141, %cst_69 [1] : vector<8x8xf32> to vector<8xf32>
    %143 = vector.shape_cast %142 : vector<8xf32> to vector<8x1xf32>
    %144 = vector.broadcast %143 : vector<8x1xf32> to vector<8x8xf32>
    %145 = arith.subf %141, %144 : vector<8x8xf32>
    %146 = vector.extract_strided_slice %123 {offsets = [0, 16], sizes = [8, 8], strides = [1, 1]} : vector<8x96xbf16> to vector<8x8xbf16>
    %147 = vector.extract_strided_slice %123 {offsets = [0, 48], sizes = [8, 8], strides = [1, 1]} : vector<8x96xbf16> to vector<8x8xbf16>
    %cst_70 = arith.constant dense<0.000000e+00> : vector<8x8xf32>
    %148 = tpu.matmul %146, %147, %cst_70 {dimension_numbers = #tpu.dot_dimension_numbers<[1], [1], [0], [0], [0, 0, 1, 0], [], []>} : vector<8x8xbf16>, vector<8x8xbf16>, vector<8x8xf32> -> vector<8x8xf32>
    %cst_71 = arith.constant 0.353553385 : f32
    %149 = vector.broadcast %cst_71 : f32 to vector<8x8xf32>
    %150 = arith.mulf %148, %149 : vector<8x8xf32>
    %151 = vector.broadcast %114 : vector<1x8xf32> to vector<8x8xf32>
    %152 = arith.addf %150, %151 : vector<8x8xf32>
    %cst_72 = arith.constant dense<0xFF800000> : vector<8xf32>
    %153 = vector.multi_reduction <maximumf>, %152, %cst_72 [1] : vector<8x8xf32> to vector<8xf32>
    %154 = vector.shape_cast %153 : vector<8xf32> to vector<8x1xf32>
    %155 = vector.broadcast %154 : vector<8x1xf32> to vector<8x8xf32>
    %156 = arith.subf %152, %155 : vector<8x8xf32>
    %157 = vector.extract_strided_slice %123 {offsets = [0, 24], sizes = [8, 8], strides = [1, 1]} : vector<8x96xbf16> to vector<8x8xbf16>
    %158 = vector.extract_strided_slice %123 {offsets = [0, 56], sizes = [8, 8], strides = [1, 1]} : vector<8x96xbf16> to vector<8x8xbf16>
    %cst_73 = arith.constant dense<0.000000e+00> : vector<8x8xf32>
    %159 = tpu.matmul %157, %158, %cst_73 {dimension_numbers = #tpu.dot_dimension_numbers<[1], [1], [0], [0], [0, 0, 1, 0], [], []>} : vector<8x8xbf16>, vector<8x8xbf16>, vector<8x8xf32> -> vector<8x8xf32>
    %cst_74 = arith.constant 0.353553385 : f32
    %160 = vector.broadcast %cst_74 : f32 to vector<8x8xf32>
    %161 = arith.mulf %159, %160 : vector<8x8xf32>
    %162 = vector.broadcast %114 : vector<1x8xf32> to vector<8x8xf32>
    %163 = arith.addf %161, %162 : vector<8x8xf32>
    %cst_75 = arith.constant dense<0xFF800000> : vector<8xf32>
    %164 = vector.multi_reduction <maximumf>, %163, %cst_75 [1] : vector<8x8xf32> to vector<8xf32>
    %165 = vector.shape_cast %164 : vector<8xf32> to vector<8x1xf32>
    %166 = vector.broadcast %165 : vector<8x1xf32> to vector<8x8xf32>
    %167 = arith.subf %163, %166 : vector<8x8xf32>
    %168 = tpu.concatenate %134, %145, %156, %167 in 0 : vector<8x8xf32>, vector<8x8xf32>, vector<8x8xf32>, vector<8x8xf32> -> vector<32x8xf32>
    %169 = math.exp %168 : vector<32x8xf32>
    %cst_76 = arith.constant dense<0.000000e+00> : vector<32xf32>
    %170 = vector.multi_reduction <add>, %169, %cst_76 [1] : vector<32x8xf32> to vector<32xf32>
    %171 = vector.shape_cast %170 : vector<32xf32> to vector<32x1xf32>
    %172 = tpu.reciprocal %171 {approx = true} : vector<32x1xf32> -> vector<32x1xf32>
    %173 = vector.broadcast %172 : vector<32x1xf32> to vector<32x8xf32>
    %174 = arith.mulf %169, %173 : vector<32x8xf32>
    %175 = vector.extract_strided_slice %174 {offsets = [0, 0], sizes = [8, 8], strides = [1, 1]} : vector<32x8xf32> to vector<8x8xf32>
    %176 = arith.truncf %175 : vector<8x8xf32> to vector<8x8xbf16>
    %177 = vector.extract_strided_slice %123 {offsets = [0, 64], sizes = [8, 8], strides = [1, 1]} : vector<8x96xbf16> to vector<8x8xbf16>
    %cst_77 = arith.constant dense<0.000000e+00> : vector<8x8xf32>
    %178 = tpu.matmul %176, %177, %cst_77 {dimension_numbers = #tpu.dot_dimension_numbers<[1], [0], [0], [1], [0, 0, 1, 1], [], []>} : vector<8x8xbf16>, vector<8x8xbf16>, vector<8x8xf32> -> vector<8x8xf32>
    %179 = vector.extract_strided_slice %174 {offsets = [8, 0], sizes = [8, 8], strides = [1, 1]} : vector<32x8xf32> to vector<8x8xf32>
    %180 = arith.truncf %179 : vector<8x8xf32> to vector<8x8xbf16>
    %181 = vector.extract_strided_slice %123 {offsets = [0, 72], sizes = [8, 8], strides = [1, 1]} : vector<8x96xbf16> to vector<8x8xbf16>
    %cst_78 = arith.constant dense<0.000000e+00> : vector<8x8xf32>
    %182 = tpu.matmul %180, %181, %cst_78 {dimension_numbers = #tpu.dot_dimension_numbers<[1], [0], [0], [1], [0, 0, 1, 1], [], []>} : vector<8x8xbf16>, vector<8x8xbf16>, vector<8x8xf32> -> vector<8x8xf32>
    %183 = vector.extract_strided_slice %174 {offsets = [16, 0], sizes = [8, 8], strides = [1, 1]} : vector<32x8xf32> to vector<8x8xf32>
    %184 = arith.truncf %183 : vector<8x8xf32> to vector<8x8xbf16>
    %185 = vector.extract_strided_slice %123 {offsets = [0, 80], sizes = [8, 8], strides = [1, 1]} : vector<8x96xbf16> to vector<8x8xbf16>
    %cst_79 = arith.constant dense<0.000000e+00> : vector<8x8xf32>
    %186 = tpu.matmul %184, %185, %cst_79 {dimension_numbers = #tpu.dot_dimension_numbers<[1], [0], [0], [1], [0, 0, 1, 1], [], []>} : vector<8x8xbf16>, vector<8x8xbf16>, vector<8x8xf32> -> vector<8x8xf32>
    %187 = vector.extract_strided_slice %174 {offsets = [24, 0], sizes = [8, 8], strides = [1, 1]} : vector<32x8xf32> to vector<8x8xf32>
    %188 = arith.truncf %187 : vector<8x8xf32> to vector<8x8xbf16>
    %189 = vector.extract_strided_slice %123 {offsets = [0, 88], sizes = [8, 8], strides = [1, 1]} : vector<8x96xbf16> to vector<8x8xbf16>
    %cst_80 = arith.constant dense<0.000000e+00> : vector<8x8xf32>
    %190 = tpu.matmul %188, %189, %cst_80 {dimension_numbers = #tpu.dot_dimension_numbers<[1], [0], [0], [1], [0, 0, 1, 1], [], []>} : vector<8x8xbf16>, vector<8x8xbf16>, vector<8x8xf32> -> vector<8x8xf32>
    %191 = tpu.concatenate %178, %182, %186, %190 in 1 : vector<8x8xf32>, vector<8x8xf32>, vector<8x8xf32>, vector<8x8xf32> -> vector<8x32xf32>
    %192 = arith.truncf %191 : vector<8x32xf32> to vector<8x32xbf16>
    %c0_81 = arith.constant 0 : index
    %c32_82 = arith.constant 32 : index
    %c0_83 = arith.constant 0 : index
    %193 = vector.load %arg4[%c0_81, %c32_82, %c0_83] : memref<3x160x128xbf16, #tpu.memory_space<vmem>>, vector<1x32x32xbf16>
    %194 = vector.shape_cast %193 : vector<1x32x32xbf16> to vector<32x32xbf16>
    %cst_84 = arith.constant dense<0.000000e+00> : vector<8x32xf32>
    %195 = tpu.matmul %192, %194, %cst_84 {dimension_numbers = #tpu.dot_dimension_numbers<[1], [0], [0], [1], [0, 0, 1, 1], [], []>} : vector<8x32xbf16>, vector<32x32xbf16>, vector<8x32xf32> -> vector<8x32xf32>
    %c0_85 = arith.constant 0 : index
    %c0_86 = arith.constant 0 : index
    %c96 = arith.constant 96 : index
    %196 = vector.load %arg5[%c0_85, %c0_86, %c96] : memref<3x1x352xf32, #tpu.memory_space<vmem>>, vector<1x1x32xf32>
    %197 = vector.shape_cast %196 : vector<1x1x32xf32> to vector<1x32xf32>
    %198 = vector.broadcast %197 : vector<1x32xf32> to vector<8x32xf32>
    %199 = arith.addf %195, %198 : vector<8x32xf32>
    %200 = arith.addf %199, %107 : vector<8x32xf32>
    %c0_87 = arith.constant 0 : index
    %c0_88 = arith.constant 0 : index
    %c128 = arith.constant 128 : index
    %201 = vector.load %arg5[%c0_87, %c0_88, %c128] : memref<3x1x352xf32, #tpu.memory_space<vmem>>, vector<1x1x32xf32>
    %202 = vector.shape_cast %201 : vector<1x1x32xf32> to vector<1x32xf32>
    %c0_89 = arith.constant 0 : index
    %c0_90 = arith.constant 0 : index
    %c160 = arith.constant 160 : index
    %203 = vector.load %arg5[%c0_89, %c0_90, %c160] : memref<3x1x352xf32, #tpu.memory_space<vmem>>, vector<1x1x32xf32>
    %204 = vector.shape_cast %203 : vector<1x1x32xf32> to vector<1x32xf32>
    %cst_91 = arith.constant dense<0.000000e+00> : vector<8xf32>
    %205 = vector.multi_reduction <add>, %200, %cst_91 [1] : vector<8x32xf32> to vector<8xf32>
    %206 = vector.shape_cast %205 : vector<8xf32> to vector<8x1xf32>
    %cst_92 = arith.constant 3.200000e+01 : f32
    %207 = vector.broadcast %cst_92 : f32 to vector<8x1xf32>
    %208 = arith.divf %206, %207 : vector<8x1xf32>
    %209 = vector.broadcast %208 : vector<8x1xf32> to vector<8x32xf32>
    %210 = arith.subf %200, %209 : vector<8x32xf32>
    %211 = arith.mulf %210, %210 : vector<8x32xf32>
    %cst_93 = arith.constant dense<0.000000e+00> : vector<8xf32>
    %212 = vector.multi_reduction <add>, %211, %cst_93 [1] : vector<8x32xf32> to vector<8xf32>
    %213 = vector.shape_cast %212 : vector<8xf32> to vector<8x1xf32>
    %cst_94 = arith.constant 3.200000e+01 : f32
    %214 = vector.broadcast %cst_94 : f32 to vector<8x1xf32>
    %215 = arith.divf %213, %214 : vector<8x1xf32>
    %216 = vector.broadcast %208 : vector<8x1xf32> to vector<8x32xf32>
    %217 = arith.subf %200, %216 : vector<8x32xf32>
    %cst_95 = arith.constant 9.99999996E-13 : f32
    %218 = vector.broadcast %cst_95 : f32 to vector<8x1xf32>
    %219 = arith.addf %215, %218 : vector<8x1xf32>
    %220 = math.rsqrt %219 : vector<8x1xf32>
    %221 = vector.broadcast %220 : vector<8x1xf32> to vector<8x32xf32>
    %222 = arith.mulf %217, %221 : vector<8x32xf32>
    %223 = vector.broadcast %202 : vector<1x32xf32> to vector<8x32xf32>
    %224 = arith.mulf %222, %223 : vector<8x32xf32>
    %225 = vector.broadcast %204 : vector<1x32xf32> to vector<8x32xf32>
    %226 = arith.addf %224, %225 : vector<8x32xf32>
    %c0_96 = arith.constant 0 : index
    %c64 = arith.constant 64 : index
    %c0_97 = arith.constant 0 : index
    %227 = vector.load %arg4[%c0_96, %c64, %c0_97] : memref<3x160x128xbf16, #tpu.memory_space<vmem>>, vector<1x32x64xbf16>
    %228 = vector.shape_cast %227 : vector<1x32x64xbf16> to vector<32x64xbf16>
    %c0_98 = arith.constant 0 : index
    %c96_99 = arith.constant 96 : index
    %c0_100 = arith.constant 0 : index
    %229 = vector.load %arg4[%c0_98, %c96_99, %c0_100] : memref<3x160x128xbf16, #tpu.memory_space<vmem>>, vector<1x64x32xbf16>
    %230 = vector.shape_cast %229 : vector<1x64x32xbf16> to vector<64x32xbf16>
    %231 = arith.truncf %226 : vector<8x32xf32> to vector<8x32xbf16>
    %cst_101 = arith.constant dense<0.000000e+00> : vector<8x64xf32>
    %232 = tpu.matmul %231, %228, %cst_101 {dimension_numbers = #tpu.dot_dimension_numbers<[1], [0], [0], [1], [0, 0, 1, 1], [], []>} : vector<8x32xbf16>, vector<32x64xbf16>, vector<8x64xf32> -> vector<8x64xf32>
    %c0_102 = arith.constant 0 : index
    %c0_103 = arith.constant 0 : index
    %c192 = arith.constant 192 : index
    %233 = vector.load %arg5[%c0_102, %c0_103, %c192] : memref<3x1x352xf32, #tpu.memory_space<vmem>>, vector<1x1x64xf32>
    %234 = vector.shape_cast %233 : vector<1x1x64xf32> to vector<1x64xf32>
    %235 = vector.broadcast %234 : vector<1x64xf32> to vector<8x64xf32>
    %236 = arith.addf %232, %235 : vector<8x64xf32>
    %cst_104 = arith.constant 5.000000e-01 : f32
    %237 = vector.broadcast %cst_104 : f32 to vector<8x64xf32>
    %238 = arith.mulf %237, %236 : vector<8x64xf32>
    %cst_105 = arith.constant 0.707106769 : f32
    %239 = vector.broadcast %cst_105 : f32 to vector<8x64xf32>
    %240 = arith.mulf %236, %239 : vector<8x64xf32>
    %241 = math.erf %240 : vector<8x64xf32>
    %cst_106 = arith.constant 1.000000e+00 : f32
    %242 = vector.broadcast %cst_106 : f32 to vector<8x64xf32>
    %243 = arith.addf %242, %241 : vector<8x64xf32>
    %244 = arith.mulf %238, %243 : vector<8x64xf32>
    %245 = arith.truncf %244 : vector<8x64xf32> to vector<8x64xbf16>
    %cst_107 = arith.constant dense<0.000000e+00> : vector<8x32xf32>
    %246 = tpu.matmul %245, %230, %cst_107 {dimension_numbers = #tpu.dot_dimension_numbers<[1], [0], [0], [1], [0, 0, 1, 1], [], []>} : vector<8x64xbf16>, vector<64x32xbf16>, vector<8x32xf32> -> vector<8x32xf32>
    %c0_108 = arith.constant 0 : index
    %c0_109 = arith.constant 0 : index
    %c256 = arith.constant 256 : index
    %247 = vector.load %arg5[%c0_108, %c0_109, %c256] : memref<3x1x352xf32, #tpu.memory_space<vmem>>, vector<1x1x32xf32>
    %248 = vector.shape_cast %247 : vector<1x1x32xf32> to vector<1x32xf32>
    %249 = vector.broadcast %248 : vector<1x32xf32> to vector<8x32xf32>
    %250 = arith.addf %246, %249 : vector<8x32xf32>
    %251 = arith.addf %250, %226 : vector<8x32xf32>
    %c0_110 = arith.constant 0 : index
    %c0_111 = arith.constant 0 : index
    %c288 = arith.constant 288 : index
    %252 = vector.load %arg5[%c0_110, %c0_111, %c288] : memref<3x1x352xf32, #tpu.memory_space<vmem>>, vector<1x1x32xf32>
    %253 = vector.shape_cast %252 : vector<1x1x32xf32> to vector<1x32xf32>
    %c0_112 = arith.constant 0 : index
    %c0_113 = arith.constant 0 : index
    %c320 = arith.constant 320 : index
    %254 = vector.load %arg5[%c0_112, %c0_113, %c320] : memref<3x1x352xf32, #tpu.memory_space<vmem>>, vector<1x1x32xf32>
    %255 = vector.shape_cast %254 : vector<1x1x32xf32> to vector<1x32xf32>
    %cst_114 = arith.constant dense<0.000000e+00> : vector<8xf32>
    %256 = vector.multi_reduction <add>, %251, %cst_114 [1] : vector<8x32xf32> to vector<8xf32>
    %257 = vector.shape_cast %256 : vector<8xf32> to vector<8x1xf32>
    %cst_115 = arith.constant 3.200000e+01 : f32
    %258 = vector.broadcast %cst_115 : f32 to vector<8x1xf32>
    %259 = arith.divf %257, %258 : vector<8x1xf32>
    %260 = vector.broadcast %259 : vector<8x1xf32> to vector<8x32xf32>
    %261 = arith.subf %251, %260 : vector<8x32xf32>
    %262 = arith.mulf %261, %261 : vector<8x32xf32>
    %cst_116 = arith.constant dense<0.000000e+00> : vector<8xf32>
    %263 = vector.multi_reduction <add>, %262, %cst_116 [1] : vector<8x32xf32> to vector<8xf32>
    %264 = vector.shape_cast %263 : vector<8xf32> to vector<8x1xf32>
    %cst_117 = arith.constant 3.200000e+01 : f32
    %265 = vector.broadcast %cst_117 : f32 to vector<8x1xf32>
    %266 = arith.divf %264, %265 : vector<8x1xf32>
    %267 = vector.broadcast %259 : vector<8x1xf32> to vector<8x32xf32>
    %268 = arith.subf %251, %267 : vector<8x32xf32>
    %cst_118 = arith.constant 9.99999996E-13 : f32
    %269 = vector.broadcast %cst_118 : f32 to vector<8x1xf32>
    %270 = arith.addf %266, %269 : vector<8x1xf32>
    %271 = math.rsqrt %270 : vector<8x1xf32>
    %272 = vector.broadcast %271 : vector<8x1xf32> to vector<8x32xf32>
    %273 = arith.mulf %268, %272 : vector<8x32xf32>
    %274 = vector.broadcast %253 : vector<1x32xf32> to vector<8x32xf32>
    %275 = arith.mulf %273, %274 : vector<8x32xf32>
    %276 = vector.broadcast %255 : vector<1x32xf32> to vector<8x32xf32>
    %277 = arith.addf %275, %276 : vector<8x32xf32>
    %c1_119 = arith.constant 1 : index
    %c0_120 = arith.constant 0 : index
    %c0_121 = arith.constant 0 : index
    %278 = vector.load %arg4[%c1_119, %c0_120, %c0_121] : memref<3x160x128xbf16, #tpu.memory_space<vmem>>, vector<1x32x96xbf16>
    %279 = vector.shape_cast %278 : vector<1x32x96xbf16> to vector<32x96xbf16>
    %280 = arith.truncf %277 : vector<8x32xf32> to vector<8x32xbf16>
    %cst_122 = arith.constant dense<0.000000e+00> : vector<8x96xf32>
    %281 = tpu.matmul %280, %279, %cst_122 {dimension_numbers = #tpu.dot_dimension_numbers<[1], [0], [0], [1], [0, 0, 1, 1], [], []>} : vector<8x32xbf16>, vector<32x96xbf16>, vector<8x96xf32> -> vector<8x96xf32>
    %c1_123 = arith.constant 1 : index
    %c0_124 = arith.constant 0 : index
    %c0_125 = arith.constant 0 : index
    %282 = vector.load %arg5[%c1_123, %c0_124, %c0_125] : memref<3x1x352xf32, #tpu.memory_space<vmem>>, vector<1x1x96xf32>
    %283 = vector.shape_cast %282 : vector<1x1x96xf32> to vector<1x96xf32>
    %284 = vector.broadcast %283 : vector<1x96xf32> to vector<8x96xf32>
    %285 = arith.addf %281, %284 : vector<8x96xf32>
    %286 = arith.truncf %285 : vector<8x96xf32> to vector<8x96xbf16>
    %287 = vector.extract_strided_slice %286 {offsets = [0, 0], sizes = [8, 8], strides = [1, 1]} : vector<8x96xbf16> to vector<8x8xbf16>
    %288 = vector.extract_strided_slice %286 {offsets = [0, 32], sizes = [8, 8], strides = [1, 1]} : vector<8x96xbf16> to vector<8x8xbf16>
    %cst_126 = arith.constant dense<0.000000e+00> : vector<8x8xf32>
    %289 = tpu.matmul %287, %288, %cst_126 {dimension_numbers = #tpu.dot_dimension_numbers<[1], [1], [0], [0], [0, 0, 1, 0], [], []>} : vector<8x8xbf16>, vector<8x8xbf16>, vector<8x8xf32> -> vector<8x8xf32>
    %cst_127 = arith.constant 0.353553385 : f32
    %290 = vector.broadcast %cst_127 : f32 to vector<8x8xf32>
    %291 = arith.mulf %289, %290 : vector<8x8xf32>
    %292 = vector.broadcast %114 : vector<1x8xf32> to vector<8x8xf32>
    %293 = arith.addf %291, %292 : vector<8x8xf32>
    %cst_128 = arith.constant dense<0xFF800000> : vector<8xf32>
    %294 = vector.multi_reduction <maximumf>, %293, %cst_128 [1] : vector<8x8xf32> to vector<8xf32>
    %295 = vector.shape_cast %294 : vector<8xf32> to vector<8x1xf32>
    %296 = vector.broadcast %295 : vector<8x1xf32> to vector<8x8xf32>
    %297 = arith.subf %293, %296 : vector<8x8xf32>
    %298 = vector.extract_strided_slice %286 {offsets = [0, 8], sizes = [8, 8], strides = [1, 1]} : vector<8x96xbf16> to vector<8x8xbf16>
    %299 = vector.extract_strided_slice %286 {offsets = [0, 40], sizes = [8, 8], strides = [1, 1]} : vector<8x96xbf16> to vector<8x8xbf16>
    %cst_129 = arith.constant dense<0.000000e+00> : vector<8x8xf32>
    %300 = tpu.matmul %298, %299, %cst_129 {dimension_numbers = #tpu.dot_dimension_numbers<[1], [1], [0], [0], [0, 0, 1, 0], [], []>} : vector<8x8xbf16>, vector<8x8xbf16>, vector<8x8xf32> -> vector<8x8xf32>
    %cst_130 = arith.constant 0.353553385 : f32
    %301 = vector.broadcast %cst_130 : f32 to vector<8x8xf32>
    %302 = arith.mulf %300, %301 : vector<8x8xf32>
    %303 = vector.broadcast %114 : vector<1x8xf32> to vector<8x8xf32>
    %304 = arith.addf %302, %303 : vector<8x8xf32>
    %cst_131 = arith.constant dense<0xFF800000> : vector<8xf32>
    %305 = vector.multi_reduction <maximumf>, %304, %cst_131 [1] : vector<8x8xf32> to vector<8xf32>
    %306 = vector.shape_cast %305 : vector<8xf32> to vector<8x1xf32>
    %307 = vector.broadcast %306 : vector<8x1xf32> to vector<8x8xf32>
    %308 = arith.subf %304, %307 : vector<8x8xf32>
    %309 = vector.extract_strided_slice %286 {offsets = [0, 16], sizes = [8, 8], strides = [1, 1]} : vector<8x96xbf16> to vector<8x8xbf16>
    %310 = vector.extract_strided_slice %286 {offsets = [0, 48], sizes = [8, 8], strides = [1, 1]} : vector<8x96xbf16> to vector<8x8xbf16>
    %cst_132 = arith.constant dense<0.000000e+00> : vector<8x8xf32>
    %311 = tpu.matmul %309, %310, %cst_132 {dimension_numbers = #tpu.dot_dimension_numbers<[1], [1], [0], [0], [0, 0, 1, 0], [], []>} : vector<8x8xbf16>, vector<8x8xbf16>, vector<8x8xf32> -> vector<8x8xf32>
    %cst_133 = arith.constant 0.353553385 : f32
    %312 = vector.broadcast %cst_133 : f32 to vector<8x8xf32>
    %313 = arith.mulf %311, %312 : vector<8x8xf32>
    %314 = vector.broadcast %114 : vector<1x8xf32> to vector<8x8xf32>
    %315 = arith.addf %313, %314 : vector<8x8xf32>
    %cst_134 = arith.constant dense<0xFF800000> : vector<8xf32>
    %316 = vector.multi_reduction <maximumf>, %315, %cst_134 [1] : vector<8x8xf32> to vector<8xf32>
    %317 = vector.shape_cast %316 : vector<8xf32> to vector<8x1xf32>
    %318 = vector.broadcast %317 : vector<8x1xf32> to vector<8x8xf32>
    %319 = arith.subf %315, %318 : vector<8x8xf32>
    %320 = vector.extract_strided_slice %286 {offsets = [0, 24], sizes = [8, 8], strides = [1, 1]} : vector<8x96xbf16> to vector<8x8xbf16>
    %321 = vector.extract_strided_slice %286 {offsets = [0, 56], sizes = [8, 8], strides = [1, 1]} : vector<8x96xbf16> to vector<8x8xbf16>
    %cst_135 = arith.constant dense<0.000000e+00> : vector<8x8xf32>
    %322 = tpu.matmul %320, %321, %cst_135 {dimension_numbers = #tpu.dot_dimension_numbers<[1], [1], [0], [0], [0, 0, 1, 0], [], []>} : vector<8x8xbf16>, vector<8x8xbf16>, vector<8x8xf32> -> vector<8x8xf32>
    %cst_136 = arith.constant 0.353553385 : f32
    %323 = vector.broadcast %cst_136 : f32 to vector<8x8xf32>
    %324 = arith.mulf %322, %323 : vector<8x8xf32>
    %325 = vector.broadcast %114 : vector<1x8xf32> to vector<8x8xf32>
    %326 = arith.addf %324, %325 : vector<8x8xf32>
    %cst_137 = arith.constant dense<0xFF800000> : vector<8xf32>
    %327 = vector.multi_reduction <maximumf>, %326, %cst_137 [1] : vector<8x8xf32> to vector<8xf32>
    %328 = vector.shape_cast %327 : vector<8xf32> to vector<8x1xf32>
    %329 = vector.broadcast %328 : vector<8x1xf32> to vector<8x8xf32>
    %330 = arith.subf %326, %329 : vector<8x8xf32>
    %331 = tpu.concatenate %297, %308, %319, %330 in 0 : vector<8x8xf32>, vector<8x8xf32>, vector<8x8xf32>, vector<8x8xf32> -> vector<32x8xf32>
    %332 = math.exp %331 : vector<32x8xf32>
    %cst_138 = arith.constant dense<0.000000e+00> : vector<32xf32>
    %333 = vector.multi_reduction <add>, %332, %cst_138 [1] : vector<32x8xf32> to vector<32xf32>
    %334 = vector.shape_cast %333 : vector<32xf32> to vector<32x1xf32>
    %335 = tpu.reciprocal %334 {approx = true} : vector<32x1xf32> -> vector<32x1xf32>
    %336 = vector.broadcast %335 : vector<32x1xf32> to vector<32x8xf32>
    %337 = arith.mulf %332, %336 : vector<32x8xf32>
    %338 = vector.extract_strided_slice %337 {offsets = [0, 0], sizes = [8, 8], strides = [1, 1]} : vector<32x8xf32> to vector<8x8xf32>
    %339 = arith.truncf %338 : vector<8x8xf32> to vector<8x8xbf16>
    %340 = vector.extract_strided_slice %286 {offsets = [0, 64], sizes = [8, 8], strides = [1, 1]} : vector<8x96xbf16> to vector<8x8xbf16>
    %cst_139 = arith.constant dense<0.000000e+00> : vector<8x8xf32>
    %341 = tpu.matmul %339, %340, %cst_139 {dimension_numbers = #tpu.dot_dimension_numbers<[1], [0], [0], [1], [0, 0, 1, 1], [], []>} : vector<8x8xbf16>, vector<8x8xbf16>, vector<8x8xf32> -> vector<8x8xf32>
    %342 = vector.extract_strided_slice %337 {offsets = [8, 0], sizes = [8, 8], strides = [1, 1]} : vector<32x8xf32> to vector<8x8xf32>
    %343 = arith.truncf %342 : vector<8x8xf32> to vector<8x8xbf16>
    %344 = vector.extract_strided_slice %286 {offsets = [0, 72], sizes = [8, 8], strides = [1, 1]} : vector<8x96xbf16> to vector<8x8xbf16>
    %cst_140 = arith.constant dense<0.000000e+00> : vector<8x8xf32>
    %345 = tpu.matmul %343, %344, %cst_140 {dimension_numbers = #tpu.dot_dimension_numbers<[1], [0], [0], [1], [0, 0, 1, 1], [], []>} : vector<8x8xbf16>, vector<8x8xbf16>, vector<8x8xf32> -> vector<8x8xf32>
    %346 = vector.extract_strided_slice %337 {offsets = [16, 0], sizes = [8, 8], strides = [1, 1]} : vector<32x8xf32> to vector<8x8xf32>
    %347 = arith.truncf %346 : vector<8x8xf32> to vector<8x8xbf16>
    %348 = vector.extract_strided_slice %286 {offsets = [0, 80], sizes = [8, 8], strides = [1, 1]} : vector<8x96xbf16> to vector<8x8xbf16>
    %cst_141 = arith.constant dense<0.000000e+00> : vector<8x8xf32>
    %349 = tpu.matmul %347, %348, %cst_141 {dimension_numbers = #tpu.dot_dimension_numbers<[1], [0], [0], [1], [0, 0, 1, 1], [], []>} : vector<8x8xbf16>, vector<8x8xbf16>, vector<8x8xf32> -> vector<8x8xf32>
    %350 = vector.extract_strided_slice %337 {offsets = [24, 0], sizes = [8, 8], strides = [1, 1]} : vector<32x8xf32> to vector<8x8xf32>
    %351 = arith.truncf %350 : vector<8x8xf32> to vector<8x8xbf16>
    %352 = vector.extract_strided_slice %286 {offsets = [0, 88], sizes = [8, 8], strides = [1, 1]} : vector<8x96xbf16> to vector<8x8xbf16>
    %cst_142 = arith.constant dense<0.000000e+00> : vector<8x8xf32>
    %353 = tpu.matmul %351, %352, %cst_142 {dimension_numbers = #tpu.dot_dimension_numbers<[1], [0], [0], [1], [0, 0, 1, 1], [], []>} : vector<8x8xbf16>, vector<8x8xbf16>, vector<8x8xf32> -> vector<8x8xf32>
    %354 = tpu.concatenate %341, %345, %349, %353 in 1 : vector<8x8xf32>, vector<8x8xf32>, vector<8x8xf32>, vector<8x8xf32> -> vector<8x32xf32>
    %355 = arith.truncf %354 : vector<8x32xf32> to vector<8x32xbf16>
    %c1_143 = arith.constant 1 : index
    %c32_144 = arith.constant 32 : index
    %c0_145 = arith.constant 0 : index
    %356 = vector.load %arg4[%c1_143, %c32_144, %c0_145] : memref<3x160x128xbf16, #tpu.memory_space<vmem>>, vector<1x32x32xbf16>
    %357 = vector.shape_cast %356 : vector<1x32x32xbf16> to vector<32x32xbf16>
    %cst_146 = arith.constant dense<0.000000e+00> : vector<8x32xf32>
    %358 = tpu.matmul %355, %357, %cst_146 {dimension_numbers = #tpu.dot_dimension_numbers<[1], [0], [0], [1], [0, 0, 1, 1], [], []>} : vector<8x32xbf16>, vector<32x32xbf16>, vector<8x32xf32> -> vector<8x32xf32>
    %c1_147 = arith.constant 1 : index
    %c0_148 = arith.constant 0 : index
    %c96_149 = arith.constant 96 : index
    %359 = vector.load %arg5[%c1_147, %c0_148, %c96_149] : memref<3x1x352xf32, #tpu.memory_space<vmem>>, vector<1x1x32xf32>
    %360 = vector.shape_cast %359 : vector<1x1x32xf32> to vector<1x32xf32>
    %361 = vector.broadcast %360 : vector<1x32xf32> to vector<8x32xf32>
    %362 = arith.addf %358, %361 : vector<8x32xf32>
    %363 = arith.addf %362, %277 : vector<8x32xf32>
    %c1_150 = arith.constant 1 : index
    %c0_151 = arith.constant 0 : index
    %c128_152 = arith.constant 128 : index
    %364 = vector.load %arg5[%c1_150, %c0_151, %c128_152] : memref<3x1x352xf32, #tpu.memory_space<vmem>>, vector<1x1x32xf32>
    %365 = vector.shape_cast %364 : vector<1x1x32xf32> to vector<1x32xf32>
    %c1_153 = arith.constant 1 : index
    %c0_154 = arith.constant 0 : index
    %c160_155 = arith.constant 160 : index
    %366 = vector.load %arg5[%c1_153, %c0_154, %c160_155] : memref<3x1x352xf32, #tpu.memory_space<vmem>>, vector<1x1x32xf32>
    %367 = vector.shape_cast %366 : vector<1x1x32xf32> to vector<1x32xf32>
    %cst_156 = arith.constant dense<0.000000e+00> : vector<8xf32>
    %368 = vector.multi_reduction <add>, %363, %cst_156 [1] : vector<8x32xf32> to vector<8xf32>
    %369 = vector.shape_cast %368 : vector<8xf32> to vector<8x1xf32>
    %cst_157 = arith.constant 3.200000e+01 : f32
    %370 = vector.broadcast %cst_157 : f32 to vector<8x1xf32>
    %371 = arith.divf %369, %370 : vector<8x1xf32>
    %372 = vector.broadcast %371 : vector<8x1xf32> to vector<8x32xf32>
    %373 = arith.subf %363, %372 : vector<8x32xf32>
    %374 = arith.mulf %373, %373 : vector<8x32xf32>
    %cst_158 = arith.constant dense<0.000000e+00> : vector<8xf32>
    %375 = vector.multi_reduction <add>, %374, %cst_158 [1] : vector<8x32xf32> to vector<8xf32>
    %376 = vector.shape_cast %375 : vector<8xf32> to vector<8x1xf32>
    %cst_159 = arith.constant 3.200000e+01 : f32
    %377 = vector.broadcast %cst_159 : f32 to vector<8x1xf32>
    %378 = arith.divf %376, %377 : vector<8x1xf32>
    %379 = vector.broadcast %371 : vector<8x1xf32> to vector<8x32xf32>
    %380 = arith.subf %363, %379 : vector<8x32xf32>
    %cst_160 = arith.constant 9.99999996E-13 : f32
    %381 = vector.broadcast %cst_160 : f32 to vector<8x1xf32>
    %382 = arith.addf %378, %381 : vector<8x1xf32>
    %383 = math.rsqrt %382 : vector<8x1xf32>
    %384 = vector.broadcast %383 : vector<8x1xf32> to vector<8x32xf32>
    %385 = arith.mulf %380, %384 : vector<8x32xf32>
    %386 = vector.broadcast %365 : vector<1x32xf32> to vector<8x32xf32>
    %387 = arith.mulf %385, %386 : vector<8x32xf32>
    %388 = vector.broadcast %367 : vector<1x32xf32> to vector<8x32xf32>
    %389 = arith.addf %387, %388 : vector<8x32xf32>
    %c1_161 = arith.constant 1 : index
    %c64_162 = arith.constant 64 : index
    %c0_163 = arith.constant 0 : index
    %390 = vector.load %arg4[%c1_161, %c64_162, %c0_163] : memref<3x160x128xbf16, #tpu.memory_space<vmem>>, vector<1x32x64xbf16>
    %391 = vector.shape_cast %390 : vector<1x32x64xbf16> to vector<32x64xbf16>
    %c1_164 = arith.constant 1 : index
    %c96_165 = arith.constant 96 : index
    %c0_166 = arith.constant 0 : index
    %392 = vector.load %arg4[%c1_164, %c96_165, %c0_166] : memref<3x160x128xbf16, #tpu.memory_space<vmem>>, vector<1x64x32xbf16>
    %393 = vector.shape_cast %392 : vector<1x64x32xbf16> to vector<64x32xbf16>
    %394 = arith.truncf %389 : vector<8x32xf32> to vector<8x32xbf16>
    %cst_167 = arith.constant dense<0.000000e+00> : vector<8x64xf32>
    %395 = tpu.matmul %394, %391, %cst_167 {dimension_numbers = #tpu.dot_dimension_numbers<[1], [0], [0], [1], [0, 0, 1, 1], [], []>} : vector<8x32xbf16>, vector<32x64xbf16>, vector<8x64xf32> -> vector<8x64xf32>
    %c1_168 = arith.constant 1 : index
    %c0_169 = arith.constant 0 : index
    %c192_170 = arith.constant 192 : index
    %396 = vector.load %arg5[%c1_168, %c0_169, %c192_170] : memref<3x1x352xf32, #tpu.memory_space<vmem>>, vector<1x1x64xf32>
    %397 = vector.shape_cast %396 : vector<1x1x64xf32> to vector<1x64xf32>
    %398 = vector.broadcast %397 : vector<1x64xf32> to vector<8x64xf32>
    %399 = arith.addf %395, %398 : vector<8x64xf32>
    %cst_171 = arith.constant 5.000000e-01 : f32
    %400 = vector.broadcast %cst_171 : f32 to vector<8x64xf32>
    %401 = arith.mulf %400, %399 : vector<8x64xf32>
    %cst_172 = arith.constant 0.707106769 : f32
    %402 = vector.broadcast %cst_172 : f32 to vector<8x64xf32>
    %403 = arith.mulf %399, %402 : vector<8x64xf32>
    %404 = math.erf %403 : vector<8x64xf32>
    %cst_173 = arith.constant 1.000000e+00 : f32
    %405 = vector.broadcast %cst_173 : f32 to vector<8x64xf32>
    %406 = arith.addf %405, %404 : vector<8x64xf32>
    %407 = arith.mulf %401, %406 : vector<8x64xf32>
    %408 = arith.truncf %407 : vector<8x64xf32> to vector<8x64xbf16>
    %cst_174 = arith.constant dense<0.000000e+00> : vector<8x32xf32>
    %409 = tpu.matmul %408, %393, %cst_174 {dimension_numbers = #tpu.dot_dimension_numbers<[1], [0], [0], [1], [0, 0, 1, 1], [], []>} : vector<8x64xbf16>, vector<64x32xbf16>, vector<8x32xf32> -> vector<8x32xf32>
    %c1_175 = arith.constant 1 : index
    %c0_176 = arith.constant 0 : index
    %c256_177 = arith.constant 256 : index
    %410 = vector.load %arg5[%c1_175, %c0_176, %c256_177] : memref<3x1x352xf32, #tpu.memory_space<vmem>>, vector<1x1x32xf32>
    %411 = vector.shape_cast %410 : vector<1x1x32xf32> to vector<1x32xf32>
    %412 = vector.broadcast %411 : vector<1x32xf32> to vector<8x32xf32>
    %413 = arith.addf %409, %412 : vector<8x32xf32>
    %414 = arith.addf %413, %389 : vector<8x32xf32>
    %c1_178 = arith.constant 1 : index
    %c0_179 = arith.constant 0 : index
    %c288_180 = arith.constant 288 : index
    %415 = vector.load %arg5[%c1_178, %c0_179, %c288_180] : memref<3x1x352xf32, #tpu.memory_space<vmem>>, vector<1x1x32xf32>
    %416 = vector.shape_cast %415 : vector<1x1x32xf32> to vector<1x32xf32>
    %c1_181 = arith.constant 1 : index
    %c0_182 = arith.constant 0 : index
    %c320_183 = arith.constant 320 : index
    %417 = vector.load %arg5[%c1_181, %c0_182, %c320_183] : memref<3x1x352xf32, #tpu.memory_space<vmem>>, vector<1x1x32xf32>
    %418 = vector.shape_cast %417 : vector<1x1x32xf32> to vector<1x32xf32>
    %cst_184 = arith.constant dense<0.000000e+00> : vector<8xf32>
    %419 = vector.multi_reduction <add>, %414, %cst_184 [1] : vector<8x32xf32> to vector<8xf32>
    %420 = vector.shape_cast %419 : vector<8xf32> to vector<8x1xf32>
    %cst_185 = arith.constant 3.200000e+01 : f32
    %421 = vector.broadcast %cst_185 : f32 to vector<8x1xf32>
    %422 = arith.divf %420, %421 : vector<8x1xf32>
    %423 = vector.broadcast %422 : vector<8x1xf32> to vector<8x32xf32>
    %424 = arith.subf %414, %423 : vector<8x32xf32>
    %425 = arith.mulf %424, %424 : vector<8x32xf32>
    %cst_186 = arith.constant dense<0.000000e+00> : vector<8xf32>
    %426 = vector.multi_reduction <add>, %425, %cst_186 [1] : vector<8x32xf32> to vector<8xf32>
    %427 = vector.shape_cast %426 : vector<8xf32> to vector<8x1xf32>
    %cst_187 = arith.constant 3.200000e+01 : f32
    %428 = vector.broadcast %cst_187 : f32 to vector<8x1xf32>
    %429 = arith.divf %427, %428 : vector<8x1xf32>
    %430 = vector.broadcast %422 : vector<8x1xf32> to vector<8x32xf32>
    %431 = arith.subf %414, %430 : vector<8x32xf32>
    %cst_188 = arith.constant 9.99999996E-13 : f32
    %432 = vector.broadcast %cst_188 : f32 to vector<8x1xf32>
    %433 = arith.addf %429, %432 : vector<8x1xf32>
    %434 = math.rsqrt %433 : vector<8x1xf32>
    %435 = vector.broadcast %434 : vector<8x1xf32> to vector<8x32xf32>
    %436 = arith.mulf %431, %435 : vector<8x32xf32>
    %437 = vector.broadcast %416 : vector<1x32xf32> to vector<8x32xf32>
    %438 = arith.mulf %436, %437 : vector<8x32xf32>
    %439 = vector.broadcast %418 : vector<1x32xf32> to vector<8x32xf32>
    %440 = arith.addf %438, %439 : vector<8x32xf32>
    %441 = vector.extract_strided_slice %440 {offsets = [0, 0], sizes = [1, 32], strides = [1, 1]} : vector<8x32xf32> to vector<1x32xf32>
    %c2_189 = arith.constant 2 : index
    %c0_190 = arith.constant 0 : index
    %c0_191 = arith.constant 0 : index
    %442 = vector.load %arg4[%c2_189, %c0_190, %c0_191] : memref<3x160x128xbf16, #tpu.memory_space<vmem>>, vector<1x32x32xbf16>
    %443 = vector.shape_cast %442 : vector<1x32x32xbf16> to vector<32x32xbf16>
    %444 = arith.truncf %441 : vector<1x32xf32> to vector<1x32xbf16>
    %cst_192 = arith.constant dense<0.000000e+00> : vector<1x32xf32>
    %445 = tpu.matmul %444, %443, %cst_192 {dimension_numbers = #tpu.dot_dimension_numbers<[1], [0], [0], [1], [0, 0, 1, 1], [], []>} : vector<1x32xbf16>, vector<32x32xbf16>, vector<1x32xf32> -> vector<1x32xf32>
    %c2_193 = arith.constant 2 : index
    %c0_194 = arith.constant 0 : index
    %c64_195 = arith.constant 64 : index
    %446 = vector.load %arg5[%c2_193, %c0_194, %c64_195] : memref<3x1x352xf32, #tpu.memory_space<vmem>>, vector<1x1x32xf32>
    %447 = vector.shape_cast %446 : vector<1x1x32xf32> to vector<1x32xf32>
    %448 = arith.addf %445, %447 : vector<1x32xf32>
    %449 = math.tanh %448 : vector<1x32xf32>
    %c2_196 = arith.constant 2 : index
    %c32_197 = arith.constant 32 : index
    %c0_198 = arith.constant 0 : index
    %450 = vector.load %arg4[%c2_196, %c32_197, %c0_198] : memref<3x160x128xbf16, #tpu.memory_space<vmem>>, vector<1x32x128xbf16>
    %451 = vector.shape_cast %450 : vector<1x32x128xbf16> to vector<32x128xbf16>
    %452 = arith.truncf %449 : vector<1x32xf32> to vector<1x32xbf16>
    %cst_199 = arith.constant dense<0.000000e+00> : vector<1x128xf32>
    %453 = tpu.matmul %452, %451, %cst_199 {dimension_numbers = #tpu.dot_dimension_numbers<[1], [0], [0], [1], [0, 0, 1, 1], [], []>} : vector<1x32xbf16>, vector<32x128xbf16>, vector<1x128xf32> -> vector<1x128xf32>
    %c2_200 = arith.constant 2 : index
    %c0_201 = arith.constant 0 : index
    %c96_202 = arith.constant 96 : index
    %454 = vector.load %arg5[%c2_200, %c0_201, %c96_202] : memref<3x1x352xf32, #tpu.memory_space<vmem>>, vector<1x1x128xf32>
    %455 = vector.shape_cast %454 : vector<1x1x128xf32> to vector<1x128xf32>
    %456 = arith.addf %453, %455 : vector<1x128xf32>
    %c0_203 = arith.constant 0 : index
    %c0_204 = arith.constant 0 : index
    %c0_205 = arith.constant 0 : index
    %457 = vector.load %arg6[%c0_203, %c0_204, %c0_205] : memref<1x1x128xf32, #tpu.memory_space<vmem>>, vector<1x1x128xf32>
    %458 = vector.shape_cast %457 : vector<1x1x128xf32> to vector<1x128xf32>
    %459 = vector.shape_cast %456 : vector<1x128xf32> to vector<1x1x128xf32>
    tpu.vector_store %arg6[%c0_203, %c0_204, %c0_205], %459 {strides = array<i32>} : memref<1x1x128xf32, #tpu.memory_space<vmem>>, vector<1x1x128xf32>,
    return
  }
  func.func @transform_0(%arg0: i32, %arg1: memref<16xi32, #tpu.memory_space<smem>>) -> (i32, i32, i32) {
    %c0_i32 = arith.constant 0 : i32
    %c0_i32_0 = arith.constant 0 : i32
    %c0_i32_1 = arith.constant 0 : i32
    return %arg0, %c0_i32, %c0_i32_0 : i32, i32, i32
  }
  func.func @transform_1(%arg0: i32, %arg1: memref<16xi32, #tpu.memory_space<smem>>) -> (i32, i32, i32) {
    %c0_i32 = arith.constant 0 : i32
    %c0_i32_0 = arith.constant 0 : i32
    %c0_i32_1 = arith.constant 0 : i32
    %c0_i32_2 = arith.constant 0 : i32
    return %c0_i32, %c0_i32_0, %c0_i32_1 : i32, i32, i32
  }
  func.func @transform_2(%arg0: i32, %arg1: memref<16xi32, #tpu.memory_space<smem>>) -> (i32, i32, i32) {
    %c0_i32 = arith.constant 0 : i32
    %c0_i32_0 = arith.constant 0 : i32
    %c0_i32_1 = arith.constant 0 : i32
    %c0_i32_2 = arith.constant 0 : i32
    return %c0_i32, %c0_i32_0, %c0_i32_1 : i32, i32, i32
  }
  func.func @transform_3(%arg0: i32, %arg1: memref<16xi32, #tpu.memory_space<smem>>) -> (i32, i32, i32) {
    %c0_i32 = arith.constant 0 : i32
    %c0_i32_0 = arith.constant 0 : i32
    %c0_i32_1 = arith.constant 0 : i32
    %c0_i32_2 = arith.constant 0 : i32
    return %c0_i32, %c0_i32_0, %c0_i32_1 : i32, i32, i32
  }
  func.func @transform_4(%arg0: i32, %arg1: memref<16xi32, #tpu.memory_space<smem>>) -> (i32, i32, i32) {
    %c0_i32 = arith.constant 0 : i32
    %c0_i32_0 = arith.constant 0 : i32
    %c0_i32_1 = arith.constant 0 : i32
    return %arg0, %c0_i32, %c0_i32_0 : i32, i32, i32
  }
}

</mosaic_0001>

<bundles_post_ra>
// kernel: bert_sentiment_forward.1
= control target key start
LH: loop header
LB: loop body
LE: loop exit
PB: predicated region body
PF: predicated region fallthrough
CT: control target
= control target key end

     0   :  { %s1948_s21 = smov [#allocation4]   ;;  %s2390_s0 = inlined_call_operand.vmem [shape: s32[16], index: 0, kind: input, shape index: {}]   ;;  %s2391_s1 = inlined_call_operand.vmem [shape: s32[2,1,8], index: 1, kind: input, shape index: {}]   ;;  %s2392_s2 = inlined_call_operand.vmem [shape: f32[116,1,32], index: 2, kind: input, shape index: {}]   ;;  %s2393_s3 = inlined_call_operand.hbm [shape: bf16[3,160,128], index: 3, kind: input, shape index: {}]   ;;  %s2394_s4 = inlined_call_operand.vmem [shape: f32[3,1,352], index: 4, kind: input, shape index: {}]   ;;  %s2395_s5 = inlined_call_operand.hbm [shape: f32[2,1,128], index: 5, kind: output, shape index: {}]  }
   0x1   :  { %2397 = sst [smem:[#allocation14_spill]] %s2393_s3  ;;  %s11_s20 = sshll.u32 %s2390_s0, 4  ;;  %s12_s20 = int_to_ptr.vmem [resolvable:$true] %s11_s20 }
   0x2   :  { %14 = dma.vmem_to_smem %s12_s20, 16, %s1948_s21, [#allocation3] }
   0x3   :  { %1922 = dma.done.wait [#allocation3], 16 }
   0x4   :  { %1923 = vsyncadd [#allocation3], 4294967280 }
   0x5   :  { %17 = sfence }
   0x6   :  { %18 = vsyncpa [#allocation6], 0 }
   0x7   :  { %19 = vsyncpa [#allocation7], 0 }
   0x8   :  { %21 = vsyncpa [#allocation7 + $0x1], 0  ;;  %s2002_s22 = smov 0   ;;  %s2004_s23 = smov 0  }
   0x9   :  { %s2006_s24 = smov 0   ;;  %s2008_s25 = smov 0  }
   0xa LB: > { %2398 = sst [smem:[#allocation12_spill]] %s1942_s24  ;;  %s2023_s0 = sadd.s32 4294967295, %s1946_s25   ;;  %s1946_s25 = sphi %s2008_s25, %s2407_s25   ;;  %s1942_s24 = sphi %s2006_s24, %s2404_s24   ;;  %s1938_s23 = sphi %s2004_s23, %s2406_s23   ;;  %s1934_s22 = sphi %s2002_s22, %s2405_s22  }
   0xb   : > { %s1538_s26 = sadd.s32 4294967294, %s1946_s25   ;;  %s2027_s27 = sadd.s32 1, %s1946_s25  }
   0xc   : > { %s123_s28 = sadd.s32 1, %s1942_s24  ;;  %s120_s29 = ssub.s32 %s1946_s25, %s2027_s27 }
   0xd   : > { %p133_p0 = scmp.ne.s32.totalorder %s1942_s24, %s1938_s23  ;;  %p121_p1 = scmp.eq.s32.totalorder %s120_s29, 0 }
   0xe   : > { %p134_p2 = scmp.eq.s32.totalorder %s2023_s0, 1  ;;  %p139_p3 = scmp.ne.s32.totalorder %s1938_s23, %s1934_s22 }
   0xf   : > { %p140_p4 = scmp.eq.s32.totalorder %s1538_s26, 1  ;;  %p1539_p7 = scmp.ge.s32.totalorder %s1946_s25, 1 }
  0x10   : > { %s2038_s30 = scalar_select %p121_p1, %s1942_s24, %s123_s28  }
  0x11   : > { %p2040_p5 = por %p134_p2, %p133_p0  ;;  %p2044_p6 = por %p140_p4, %p139_p3 }
  0x12   : > { %2399 = sst [smem:[#allocation13_spill]] %s2038_s30  ;;  %p147_p8 = scmp.lt.s32.totalorder %s1946_s25, 3 }
  0x13   : > { %p1722_p9 = scmp.eq.s32.totalorder %s2023_s0, 0  ;;  %s2402_s3 = sld [smem:[#allocation14_spill]] }
  0x14   : > { %p148_p10 = pnand %p1539_p7, %p147_p8  ;;  %s1949_s11 = smov [#allocation5]  }
  0x15   : > { %s163_s12 = sshll.u32 %s1949_s11, 4  ;;  %s1950_s13 = smov 64   ;;  %s164_s12 = int_to_ptr.vmem [resolvable:$true] %s163_s12 }
  0x16   : > { %p1714_p11 = pneg %p148_p10  ;;  %s1951_s14 = smov 4  }
  0x17   : > { %188 = sbr.rel (%p148_p10) target bundleno = 4411 (0x113b), region = 36 }
  0x18   : > { %p1715_p12 = pnand %p1722_p9, %p1714_p11 }
  0x19   : > { %s161_s10 = sshll.u32 %s2402_s3, 4  ;;  %s162_s10 = int_to_ptr.hbm [resolvable:$true] %s161_s10 }
  0x1a   : > { %1717 = dma.hbm_to_vmem [thread:$0]  (!%p1715_p12), %s162_s10, 3840, %s164_s12, [#allocation6], %s1950_s13, %s1950_s13, %s1951_s14  }
  0x1c   : > { %1925 = dma.done.wait (%p1722_p9), [#allocation6], 3840  }
  0x1d   : > { %1927 = vsyncadd (%p1722_p9), [#allocation6], 4294963456  ;;  %s2061_s15 = sshll.u32 %s2023_s0, 3  ;;  %v1545_v0 = vld [vmem:[%s2392_s2 + $0x64] sm:$0x1]  ;;  %vm223_vm0 = vcmask 253952  }
  0x1e   : > { %s217_s16 = sld [smem:[#allocation4 + %s2061_s15]]  ;;  %s225_s17 = sadd.s32 1, %s2061_s15  ;;  %v1546_v1 = vld [vmem:[%s2392_s2 + $0x65] sm:$0x1]  ;;  %v1547_v3 = vld [vmem:[%s2392_s2 + $0x66] sm:$0x1] }
  0x1f   : > { %s226_s18 = sld [smem:[#allocation4 + %s225_s17]]  ;;  %s233_s19 = sadd.s32 2, %s2061_s15  ;;  %v1548_v4 = vld [vmem:[%s2392_s2 + $0x67] sm:$0x1]  ;;  %v1549_v7 = vld [vmem:[%s2392_s2 + $0x68] sm:$0x1] }
  0x20   : > { %s234_s20 = sld [smem:[#allocation4 + %s233_s19]]  ;;  %s241_s21 = sadd.s32 3, %s2061_s15  ;;  %v1550_v10 = vld [vmem:[%s2392_s2 + $0x69] sm:$0x1]  ;;  %v1551_v15 = vld [vmem:[%s2392_s2 + $0x6a] sm:$0x1] }
  0x21   : > { %s242_s26 = sld [smem:[#allocation4 + %s241_s21]]  ;;  %s249_s28 = sadd.s32 4, %s2061_s15  ;;  %v1552_v19 = vld [vmem:[%s2392_s2 + $0x6b] sm:$0x1]  ;;  %vm284_vm1 = vcmask 261120   ;;  %v1952_v26 = vmov 32.0  }
  0x22   : > { %s2068_s29 = sld [smem:[#allocation4 + %s249_s28]]  ;;  %s257_s8 = sadd.s32 5, %s2061_s15  ;;  %1785 = vrcp.f32 %v1952_v26  ;;  %v1778_v27 = vld [vmem:[%s2394_s4 + $0x6] ss:$0 sm:$0xff]  ;;  %v1685_v39 = vld [vmem:[#allocation5 + $0x8] sm:$0xff]  ;;  %v1684_v40 = vld [vmem:[#allocation5] sm:$0xff] }
  0x23   : > { %s2071_s9 = sld [smem:[#allocation4 + %s257_s8]]  ;;  %s265_s10 = sadd.s32 6, %s2061_s15  ;;  %355 = vmatpush.bf16.msra.mxu0 %v1685_v39  ;;  %v2151_v56 = vld [vmem:[%s2394_s4] ss:$0 sm:$0xff]  ;;  %vm368_vm6 = vcmask 64512   ;;  %vm518_vm8 = vcmask 1043456  }
  0x24   : > { %s218_s13 = scalar_lea.vmem %s2392_s2, %s217_s16  ;;  %s1956_s3 = smov 88   ;;  %vm614_vm9 = vcmask 130048   ;;  %vm616_vm10 = vcmask 195584  }
  0x25   : > { %v219_v2 = vld [vmem:[%s218_s13] sm:$0x1]  ;;  %s227_s8 = scalar_lea.vmem %s2392_s2, %s226_s18  ;;  %s266_s18 = sld [smem:[#allocation4 + %s265_s10]] }
  0x26   : > { %v222_v5 = vadd.f32 %v1545_v0, %v219_v2  ;;  %v228_v6 = vld [vmem:[%s227_s8] sm:$0x1]  ;;  %s235_s14 = scalar_lea.vmem %s2392_s2, %s234_s20  ;;  %s273_s8 = sadd.s32 7, %s2061_s15 }
  0x27   : > { %v231_v8 = vadd.f32 %v1546_v1, %v228_v6  ;;  %v236_v9 = vld [vmem:[%s235_s14] sm:$0x1]  ;;  %s243_s19 = scalar_lea.vmem %s2392_s2, %s242_s26  ;;  %s274_s10 = sld [smem:[#allocation4 + %s273_s8]]  ;;  %356 = vmatpush.bf16.msra.mxu0 %v1684_v40 }
  0x28   : > { %224 = vst.msk [vmem:[#allocation2] sm:$0x1] %vm223_vm0, %v222_v5  ;;  %v239_v11 = vadd.f32 %v1547_v3, %v236_v9  ;;  %v244_v12 = vld [vmem:[%s243_s19] sm:$0x1]  ;;  %s251_s11 = scalar_lea.vmem %s2392_s2, %s2068_s29  ;;  %s1953_s8 = smov 96   ;;  %v1786_v28 = vpop.eup %1785 }
  0x29   : > { %232 = vst.msk [vmem:[#allocation2 + $0x1] sm:$0x1] %vm223_vm0, %v231_v8  ;;  %v247_v13 = vadd.f32 %v1548_v4, %v244_v12  ;;  %v252_v14 = vld [vmem:[%s251_s11] sm:$0x1]  ;;  %s259_s12 = scalar_lea.vmem %s2392_s2, %s2071_s9  ;;  %318 = vrot.lane.b32.xlu1 %v1778_v27, %s1953_s8  ;;  %v289_v29 = vmul.f32 32.0, %v1786_v28  ;;  %vm293_vm2 = vweird.f32 %v1786_v28  ;;  %s1954_s11 = smov 112  }
  0x2a   : > { %240 = vst.msk [vmem:[#allocation2 + $0x2] sm:$0x1] %vm223_vm0, %v239_v11  ;;  %v255_v16 = vadd.f32 %v1549_v7, %v252_v14  ;;  %v260_v17 = vld [vmem:[%s259_s12] sm:$0x1]  ;;  %s1957_s26 = smov 120   ;;  %s1958_s12 = smov 72  }
  0x2b   : > { %248 = vst.msk [vmem:[#allocation2 + $0x3] sm:$0x1] %vm223_vm0, %v247_v13  ;;  %v263_v18 = vadd.f32 %v1550_v10, %v260_v17  ;;  %s267_s9 = scalar_lea.vmem %s2392_s2, %s266_s18  ;;  %v290_v30 = vsub.f32 1.0, %v289_v29  ;;  %s1959_s14 = smov 104   ;;  %v1960_v11 = vmov -10000.0  }
  0x2c   : > { %256 = vst.msk [vmem:[#allocation2 + $0x4] sm:$0x1] %vm223_vm0, %v255_v16  ;;  %v268_v20 = vld [vmem:[%s267_s9] sm:$0x1]  ;;  %p212_p13 = scmp.lt.s32.totalorder %s2023_s0, 1  ;;  %s1961_s24 = smov 48  }
  0x2d   : > { %264 = vst.msk [vmem:[#allocation2 + $0x5] sm:$0x1] %vm223_vm0, %v263_v18  ;;  %v271_v21 = vadd.f32 %v1551_v15, %v268_v20  ;;  %s275_s21 = scalar_lea.vmem %s2392_s2, %s274_s10  ;;  %v291_v31 = vmul.f32 %v1786_v28, %v290_v30  ;;  %s1955_s10 = smov 80  }
  0x2e   : > { %v276_v22 = vld [vmem:[%s275_s21] sm:$0x1]  ;;  %s213_s13 = scalar_select %p212_p13, %s2023_s0, 1 }
  0x2f   : > { %272 = vst.msk [vmem:[#allocation2 + $0x6] sm:$0x1] %vm223_vm0, %v271_v21  ;;  %v279_v23 = vadd.f32 %v1552_v19, %v276_v22  ;;  %v292_v32 = vadd.f32 %v1786_v28, %v291_v31  ;;  %s1962_s9 = smov 40   ;;  %s1963_s30 = smov 56  }
  0x30   : > { %s214_s17 = scalar_lea.vmem %s2391_s1, %s213_s13  ;;  %s1964_s19 = smov 64  }
  0x31   : > { %280 = vst.msk [vmem:[#allocation2 + $0x7] sm:$0x1] %vm223_vm0, %v279_v23  ;;  %v2138_v33 = vsel %vm293_vm2, %v1786_v28, %v292_v32  ;;  %v322_v10 = vld [vmem:[%s214_s17] sm:$0x1]  ;;  %s1965_s21 = smov 8   ;;  %s1966_s18 = smov 16  }
  0x32   : > { %vm323_vm7 = vcmp.gt.s32.totalorder %v322_v10, 0  ;;  %s1967_s28 = smov 24   ;;  %s1968_s20 = smov 32  }
  0x33   : > { %v324_v12 = vsel %vm323_vm7, 0.0, %v1960_v11  ;;  %s1898_s16 = scalar_lea.hbm %s2395_s5, 2 }
  0x34   : > { %v2183_v13 = vperm.slane %v324_v12, 0 }
  0x38   : > { %v281_v24 = vld [vmem:[#allocation2] sm:$0xff] }
  0x39   : > { %v285_v25 = vsel %vm284_vm1, %v281_v24, 0.0 }
  0x3a   : > { %286 = vadd.xlane.f32.xlu0 %v285_v25 }
  0x9b   : > { %v319_v52 = vpop.permute.xlu1 %318 }
  0xad   : > { %v287_v34 = vpop.xlane.xlu0 %286 }
  0xae   : > { %v295_v35 = vmul.f32 %v2138_v33, %v287_v34 }
  0xb0   : > { %v296_v36 = vsub.f32 %v281_v24, %v295_v35 }
  0xb2   : > { %v297_v37 = vmul.f32 %v296_v36, %v296_v36 }
  0xb4   : > { %v298_v38 = vsel %vm284_vm1, %v297_v37, 0.0 }
  0xb5   : > { %299 = vadd.xlane.f32.xlu0 %v298_v38 }
 0x128   : > { %v300_v41 = vpop.xlane.xlu0 %299 }
 0x129   : > { %v301_v42 = vmul.f32 %v300_v41, %v2138_v33 }
 0x12b   : > { %v302_v43 = vadd.f32 1e-12, %v301_v42 }
 0x12d   : > { %1787 = vrsqrt.f32 %v302_v43  ;;  %vm309_vm4 = vweird.f32 %v302_v43 }
 0x133   : > { %v1788_v44 = vpop.eup %1787 }
 0x134   : > { %v304_v45 = vmul.f32 %v1788_v44, %v302_v43  ;;  %vm310_vm3 = vweird.f32 %v1788_v44 }
 0x135   : > { %vm311_vm5 = vmor %vm309_vm4, %vm310_vm3  ;;  %vm803_vm3 = vcmask 523264  }
 0x136   : > { %v305_v46 = vmul.f32 %v1788_v44, %v304_v45 }
 0x138   : > { %v306_v47 = vmul.f32 0.5, %v305_v46 }
 0x13a   : > { %v307_v48 = vsub.f32 1.5, %v306_v47 }
 0x13c   : > { %v308_v49 = vmul.f32 %v1788_v44, %v307_v48 }
 0x13e   : > { %v312_v50 = vsel %vm311_vm5, %v1788_v44, %v308_v49 }
 0x13f   : > { %v313_v51 = vmul.f32 %v312_v50, %v296_v36 }
 0x141   : > { %v317_v53 = vmul.f32 %v1778_v27, %v313_v51 }
 0x143   : > { %v2143_v54 = vadd.f32 %v319_v52, %v317_v53 }
 0x145   : > { %v329_v55 = vpack.c.bf16 %v2143_v54, %v2143_v54 }
 0x147   : > { %1562 = vmatmul.msk.bf16.vlgmr.msra.gmra.mxu0 %vm284_vm1, %v329_v55 }
 0x1c4   : > { %v358_v57 = vpop.f32.mrf.mxu0 }
 0x1c5   : > { %v359_v58 = vadd.f32 %v2151_v56, %v358_v57 }
 0x1c7   : > { %v362_v59 = vpack.c.bf16 %v359_v58, %v359_v58 }
 0x1c9   : > { %v364_v60 = vunpack.c.l.b16 %v362_v59 }
 0x1cb   : > { %v2154_v61 = vpack.c.b16 %v364_v60, %v364_v60 }
 0x1cc   : > { %v360_v62 = vpop.f32.mrf.mxu0 }
 0x1cd   : > { %426 = vrot.lane.b32.xlu0 %v2154_v61, %s1954_s11  ;;  %428 = vrot.lane.b32.xlu2 %v2154_v61, %s1955_s10 }
 0x1ce   : > { %399 = vrot.lane.b32.xlu1 %v2154_v61, %s1956_s3 }
 0x1d5   : > { %397 = vrot.lane.b32.xlu2 %v2154_v61, %s1957_s26 }
 0x1d6   : > { %457 = vrot.lane.b32.xlu1 %v2154_v61, %s1958_s12 }
 0x1dd   : > { %455 = vrot.lane.b32.xlu2 %v2154_v61, %s1959_s14 }
 0x1de   : > { %366 = vrot.lane.b32.xlu1 %v2154_v61, %s1953_s8 }
 0x227   : > { %v429_v63 = vpop.permute.xlu2 %428 }
 0x228   : > { %v434_v0 = vsel %vm368_vm6, %v429_v63, 0 }
 0x229   : > { %443 = vmatpush.bf16.xpose.msra.mxu3 %v434_v0 }
 0x22f   : > { %v398_v4 = vpop.permute.xlu2 %397 }
 0x237   : > { %v456_v7 = vpop.permute.xlu2 %455 }
 0x23f   : > { %v427_v1 = vpop.permute.xlu0 %426 }
 0x240   : > { %v400_v2 = vpop.permute.xlu1 %399  ;;  %1565 = vmatmul.msk.bf16.vlgmr.msra.gmra.mxu3 %vm368_vm6, %v427_v1 }
 0x241   : > { %v405_v3 = vsel %vm368_vm6, %v400_v2, 0 }
 0x242   : > { %414 = vmatpush.bf16.xpose.msra.mxu2 %v405_v3 }
 0x248   : > { %v458_v5 = vpop.permute.xlu1 %457 }
 0x249   : > { %1564 = vmatmul.msk.bf16.vlgmr.msra.gmra.mxu2 %vm368_vm6, %v398_v4  ;;  %v463_v6 = vsel %vm368_vm6, %v458_v5, 0 }
 0x24a   : > { %472 = vmatpush.bf16.xpose.msrb.mxu0 %v463_v6 }
 0x250   : > { %v367_v8 = vpop.permute.xlu1 %366 }
 0x251   : > { %1566 = vmatmul.msk.bf16.vlgmr.msrb.gmra.mxu0 %vm368_vm6, %v456_v7  ;;  %v373_v9 = vsel %vm368_vm6, %v367_v8, 0 }
 0x252   : > { %382 = vmatpush.bf16.xpose.msra.mxu1 %v373_v9 }
 0x259   : > { %1563 = vmatmul.msk.bf16.vlgmr.msra.gmra.mxu1 %vm368_vm6, %v362_v59 }
 0x2c3   : > { %v445_v14 = vpop.f32.mrf.mxu3 }
 0x2c4   : > { %v449_v15 = vmul.f32 0.35355338, %v445_v14 }
 0x2c6   : > { %v450_v16 = vadd.f32 %v449_v15, %v2183_v13 }
 0x2c8   : > { %v451_v17 = vsel %vm368_vm6, %v450_v16, -inf }
 0x2c9   : > { %452 = vmax.xlane.f32.xlu1 %v451_v17 }
 0x2cb   : > { %v447_v18 = vpop.f32.mrf.mxu3 }
 0x2cc   : > { %v416_v19 = vpop.f32.mrf.mxu2 }
 0x2cd   : > { %v420_v20 = vmul.f32 0.35355338, %v416_v19 }
 0x2ce   : > { %v474_v21 = vpop.f32.mrf.mxu0 }
 0x2cf   : > { %v478_v22 = vmul.f32 0.35355338, %v474_v21  ;;  %v421_v23 = vadd.f32 %v420_v20, %v2183_v13 }
 0x2d1   : > { %v422_v24 = vsel %vm368_vm6, %v421_v23, -inf  ;;  %v479_v25 = vadd.f32 %v478_v22, %v2183_v13 }
 0x2d2   : > { %423 = vmax.xlane.f32.xlu2 %v422_v24 }
 0x2d3   : > { %v480_v26 = vsel %vm368_vm6, %v479_v25, -inf }
 0x2d4   : > { %v418_v27 = vpop.f32.mrf.mxu2  ;;  %481 = vmax.xlane.f32.xlu0 %v480_v26  ;;  %v1687_v26 = vld [vmem:[#allocation5 + $0x18] sm:$0xff] }
 0x2d5   : > { %v1686_v27 = vld [vmem:[#allocation5 + $0x10] sm:$0xff] }
 0x2d6   : > { %v384_v28 = vpop.f32.mrf.mxu1  ;;  %v476_v29 = vpop.f32.mrf.mxu0 }
 0x2d7   : > { %v388_v30 = vmul.f32 0.35355338, %v384_v28 }
 0x2d9   : > { %v392_v31 = vadd.f32 %v2183_v13, %v388_v30 }
 0x2db   : > { %v393_v32 = vsel %vm368_vm6, %v392_v31, -inf }
 0x2dc   : > { %394 = vmax.xlane.f32.xlu2 %v393_v32 }
 0x2de   : > { %v386_v34 = vpop.f32.mrf.mxu1 }
 0x33c   : > { %v453_v35 = vpop.xlane.xlu1 %452 }
 0x33d   : > { %v454_v36 = vsub.f32 %v450_v16, %v453_v35 }
 0x33f   : > { %v488_v37 = vmul.f32 1.442695, %v454_v36 }
 0x341   : > { %1789 = vpow2.f32 %v488_v37 }
 0x345   : > { %v424_v38 = vpop.xlane.xlu2 %423 }
 0x346   : > { %v425_v39 = vsub.f32 %v421_v23, %v424_v38 }
 0x347   : > { %v1790_v40 = vpop.eup %1789  ;;  %v482_v41 = vpop.xlane.xlu0 %481 }
 0x348   : > { %v486_v42 = vmul.f32 1.442695, %v425_v39  ;;  %v483_v43 = vsub.f32 %v479_v25, %v482_v41  ;;  %v498_v44 = vsel %vm368_vm6, %v1790_v40, 0.0  ;;  %v1780_v41 = vld [vmem:[%s2394_s4 + $0x1] ss:$0 sm:$0xff] }
 0x349   : > { %499 = vadd.xlane.f32.xlu1 %v498_v44 }
 0x34a   : > { %1791 = vpow2.f32 %v486_v42  ;;  %v490_v45 = vmul.f32 1.442695, %v483_v43 }
 0x34c   : > { %1793 = vpow2.f32 %v490_v45 }
 0x34f   : > { %v395_v50 = vpop.xlane.xlu2 %394 }
 0x350   : > { %v1792_v46 = vpop.eup %1791  ;;  %v396_v51 = vsub.f32 %v392_v31, %v395_v50 }
 0x351   : > { %v495_v47 = vsel %vm368_vm6, %v1792_v46, 0.0 }
 0x352   : > { %v1794_v48 = vpop.eup %1793  ;;  %496 = vadd.xlane.f32.xlu2 %v495_v47  ;;  %v484_v52 = vmul.f32 1.442695, %v396_v51  ;;  %v1688_v47 = vld [vmem:[#allocation5 + $0x20] sm:$0xff] }
 0x353   : > { %v501_v49 = vsel %vm368_vm6, %v1794_v48, 0.0 }
 0x354   : > { %502 = vadd.xlane.f32.xlu0 %v501_v49  ;;  %1795 = vpow2.f32 %v484_v52 }
 0x35a   : > { %v1796_v53 = vpop.eup %1795 }
 0x35b   : > { %v492_v55 = vsel %vm368_vm6, %v1796_v53, 0.0 }
 0x362   : > { %558 = vrot.lane.b32.xlu1 %v2154_v61, %s1961_s24 }
 0x368   : > { %580 = vrot.lane.b32.xlu0 %v2154_v61, %s1962_s9 }
 0x36a   : > { %536 = vrot.lane.b32.xlu2 %v2154_v61, %s1963_s30 }
 0x370   : > { %513 = vrot.lane.b32.xlu0 %v2154_v61, %s1964_s19 }
 0x393   : > { %493 = vadd.xlane.f32.xlu2 %v492_v55 }
 0x3ab   : > { %682 = vrot.lane.b32.xlu2 %v1780_v41, %s1953_s8 }
 0x3bc   : > { %v500_v58 = vpop.xlane.xlu1 %499 }
 0x3c5   : > { %v497_v57 = vpop.xlane.xlu2 %496 }
 0x3c6   : > { %1797 = vrcp.f32 %v497_v57 }
 0x3c7   : > { %1799 = vrcp.f32 %v500_v58  ;;  %v503_v62 = vpop.xlane.xlu0 %502 }
 0x3c8   : > { %1801 = vrcp.f32 %v503_v62 }
 0x3cc   : > { %v1798_v59 = vpop.eup %1797 }
 0x3cd   : > { %v509_v60 = vmul.f32 %v1798_v59, %v1792_v46  ;;  %v537_v63 = vpop.permute.xlu2 %536  ;;  %v1800_v1 = vpop.eup %1799 }
 0x3ce   : > { %v542_v0 = vsel %vm518_vm8, %v537_v63, 0  ;;  %v510_v2 = vmul.f32 %v1800_v1, %v1790_v40  ;;  %v1802_v5 = vpop.eup %1801 }
 0x3cf   : > { %551 = vmatpush.bf16.msrb.mxu2 %v542_v0  ;;  %v535_v61 = vpack.c.bf16 %v509_v60, %v509_v60  ;;  %v511_v7 = vmul.f32 %v1802_v5, %v1794_v48 }
 0x3d0   : > { %v557_v6 = vpack.c.bf16 %v510_v2, %v510_v2 }
 0x3d1   : > { %v579_v10 = vpack.c.bf16 %v511_v7, %v511_v7 }
 0x3d2   : > { %1568 = vmatmul.msk.bf16.vlgmr.msrb.gmra.mxu2 %vm368_vm6, %v535_v61 }
 0x3d4   : > { %v559_v3 = vpop.permute.xlu1 %558 }
 0x3d5   : > { %v564_v4 = vsel %vm518_vm8, %v559_v3, 0 }
 0x3d6   : > { %573 = vmatpush.bf16.msrb.mxu3 %v564_v4 }
 0x3d9   : > { %1569 = vmatmul.msk.bf16.vlgmr.msrb.gmra.mxu3 %vm368_vm6, %v557_v6 }
 0x3da   : > { %v581_v8 = vpop.permute.xlu0 %580 }
 0x3db   : > { %v586_v9 = vsel %vm518_vm8, %v581_v8, 0  ;;  %v1693_v8 = vld [vmem:[#allocation5 + $0x48] sm:$0xff] }
 0x3dc   : > { %595 = vmatpush.bf16.msra.mxu0 %v586_v9  ;;  %811 = vmatpush.bf16.msra.mxu3 %v1693_v8 }
 0x3df   : > { %1570 = vmatmul.msk.bf16.vlgmr.msra.gmra.mxu0 %vm368_vm6, %v579_v10 }
 0x3e2   : > { %v514_v11 = vpop.permute.xlu0 %513 }
 0x3e3   : > { %v520_v12 = vsel %vm518_vm8, %v514_v11, 0 }
 0x3e4   : > { %529 = vmatpush.bf16.msrb.mxu1 %v520_v12 }
 0x3e8   : > { %647 = vmatpush.bf16.msra.mxu1 %v1687_v26 }
 0x3ec   : > { %648 = vmatpush.bf16.msra.mxu1 %v1686_v27  ;;  %v1781_v27 = vld [vmem:[%s2394_s4 + $0x2] ss:$0 sm:$0xff] }
 0x406   : > { %v494_v14 = vpop.xlane.xlu2 %493 }
 0x407   : > { %1803 = vrcp.f32 %v494_v14  ;;  %v1692_v14 = vld [vmem:[#allocation5 + $0x40] sm:$0xff] }
 0x408   : > { %812 = vmatpush.bf16.msra.mxu3 %v1692_v14 }
 0x40d   : > { %v1804_v15 = vpop.eup %1803 }
 0x40e   : > { %v508_v16 = vmul.f32 %v1804_v15, %v1796_v53  ;;  %v683_v62 = vpop.permute.xlu2 %682 }
 0x410   : > { %v512_v17 = vpack.c.bf16 %v508_v16, %v508_v16 }
 0x412   : > { %1567 = vmatmul.msk.bf16.vlgmr.msrb.gmra.mxu1 %vm368_vm6, %v512_v17 }
 0x455   : > { %v553_v18 = vpop.f32.mrf.mxu2 }
 0x456   : > { %602 = vrot.lane.b32.xlu1 %v553_v18, %s1965_s21 }
 0x45c   : > { %v597_v19 = vpop.f32.mrf.mxu0  ;;  %v575_v20 = vpop.f32.mrf.mxu3 }
 0x45d   : > { %v555_v21 = vpop.f32.mrf.mxu2  ;;  %606 = vrot.lane.b32.xlu0 %v575_v20, %s1966_s18 }
 0x45e   : > { %610 = vrot.lane.b32.xlu1 %v597_v19, %s1967_s28  ;;  %v1691_v19 = vld [vmem:[#allocation5 + $0x38] sm:$0xff] }
 0x45f   : > { %813 = vmatpush.bf16.msra.mxu3 %v1691_v19 }
 0x464   : > { %v599_v22 = vpop.f32.mrf.mxu0  ;;  %v577_v23 = vpop.f32.mrf.mxu3 }
 0x465   : > { %635 = vrot.lane.b32.xlu0 %v2151_v56, %s1968_s20  ;;  %v1690_v23 = vld [vmem:[#allocation5 + $0x30] sm:$0xff] }
 0x466   : > { %814 = vmatpush.bf16.msra.mxu3 %v1690_v23 }
 0x48f   : > { %v531_v24 = vpop.f32.mrf.mxu1 }
 0x497   : > { %v533_v25 = vpop.f32.mrf.mxu1 }
 0x4c8   : > { %v603_v28 = vpop.permute.xlu1 %602 }
 0x4c9   : > { %v613_v29 = vsel %vm368_vm6, %v531_v24, %v603_v28 }
 0x4cf   : > { %v607_v30 = vpop.permute.xlu0 %606 }
 0x4d0   : > { %v615_v31 = vsel %vm614_vm9, %v613_v29, %v607_v30  ;;  %v611_v32 = vpop.permute.xlu1 %610 }
 0x4d1   : > { %v617_v34 = vsel %vm616_vm10, %v615_v31, %v611_v32 }
 0x4d2   : > { %v618_v35 = vpack.c.bf16 %v617_v34, %v617_v34 }
 0x4d4   : > { %1579 = vmatmul.msk.bf16.vlgmr.msra.gmra.mxu1 %vm284_vm1, %v618_v35 }
 0x4d7   : > { %v636_v56 = vpop.permute.xlu0 %635 }
 0x551   : > { %v650_v36 = vpop.f32.mrf.mxu1 }
 0x552   : > { %v651_v37 = vadd.f32 %v650_v36, %v636_v56 }
 0x554   : > { %v654_v38 = vadd.f32 %v651_v37, %v2143_v54  ;;  %v1689_v54 = vld [vmem:[#allocation5 + $0x28] sm:$0xff] }
 0x555   : > { %723 = vmatpush.bf16.msra.mxu2 %v1689_v54 }
 0x556   : > { %v656_v39 = vsel %vm284_vm1, %v654_v38, 0.0 }
 0x557   : > { %657 = vadd.xlane.f32.xlu1 %v656_v39 }
 0x559   : > { %v652_v40 = vpop.f32.mrf.mxu1  ;;  %724 = vmatpush.bf16.msra.mxu2 %v1688_v47 }
 0x570   : > { %711 = vrot.lane.b32.xlu1 %v1780_v41, %s1964_s19 }
 0x578   : > { %847 = vrot.lane.b32.xlu1 %v1781_v27, %s1964_s19 }
 0x5ca   : > { %v658_v42 = vpop.xlane.xlu1 %657 }
 0x5cb   : > { %v659_v43 = vmul.f32 %v658_v42, %v2138_v33 }
 0x5cd   : > { %v660_v44 = vsub.f32 %v654_v38, %v659_v43 }
 0x5cf   : > { %v661_v45 = vmul.f32 %v660_v44, %v660_v44 }
 0x5d1   : > { %v662_v46 = vsel %vm284_vm1, %v661_v45, 0.0 }
 0x5d2   : > { %663 = vadd.xlane.f32.xlu0 %v662_v46 }
 0x5e2   : > { %v712_v1 = vpop.permute.xlu1 %711 }
 0x645   : > { %v664_v48 = vpop.xlane.xlu0 %663 }
 0x646   : > { %v665_v49 = vmul.f32 %v664_v48, %v2138_v33 }
 0x648   : > { %v666_v50 = vadd.f32 1e-12, %v665_v49 }
 0x64a   : > { %1805 = vrsqrt.f32 %v666_v50  ;;  %vm673_vm12 = vweird.f32 %v666_v50 }
 0x650   : > { %v1806_v51 = vpop.eup %1805 }
 0x651   : > { %v668_v52 = vmul.f32 %v1806_v51, %v666_v50  ;;  %vm674_vm11 = vweird.f32 %v1806_v51 }
 0x652   : > { %vm675_vm13 = vmor %vm673_vm12, %vm674_vm11 }
 0x653   : > { %v669_v53 = vmul.f32 %v1806_v51, %v668_v52 }
 0x655   : > { %v670_v55 = vmul.f32 0.5, %v669_v53 }
 0x657   : > { %v671_v57 = vsub.f32 1.5, %v670_v55 }
 0x659   : > { %v672_v58 = vmul.f32 %v1806_v51, %v671_v57 }
 0x65b   : > { %v676_v59 = vsel %vm675_vm13, %v1806_v51, %v672_v58 }
 0x65c   : > { %v677_v60 = vmul.f32 %v676_v59, %v660_v44 }
 0x65e   : > { %v681_v63 = vmul.f32 %v1780_v41, %v677_v60 }
 0x660   : > { %v2232_v0 = vadd.f32 %v683_v62, %v681_v63  ;;  %v1695_v63 = vld [vmem:[#allocation5 + $0x58] sm:$0xff] }
 0x661   : > { %883 = vmatpush.bf16.msrb.mxu0 %v1695_v63 }
 0x662   : > { %v698_v61 = vpack.c.bf16 %v2232_v0, %v2232_v0 }
 0x664   : > { %1588 = vmatmul.msk.bf16.vlgmr.msra.gmra.mxu2 %vm284_vm1, %v698_v61  ;;  %v1694_v61 = vld [vmem:[#allocation5 + $0x50] sm:$0xff] }
 0x665   : > { %884 = vmatpush.bf16.msrb.mxu0 %v1694_v61 }
 0x6e7   : > { %v726_v2 = vpop.f32.mrf.mxu2 }
 0x6e8   : > { %v727_v3 = vadd.f32 %v726_v2, %v712_v1 }
 0x6ea   : > { %v731_v4 = vmul.f32 0.70710677, %v727_v3  ;;  %v730_v54 = vmul.f32 0.5, %v727_v3 }
 0x6ec   : > { %v732_v5 = vmul.f32 %v731_v4, %v731_v4 }
 0x6ee   : > { %v733_v6 = vmin.f32 %v732_v5, 16.0 }
 0x6ef   : > { %v728_v7 = vpop.f32.mrf.mxu2 }
 0x6f0   : > { %v734_v9 = vmul.f32 2.1237322e-06, %v733_v6  ;;  %v745_v10 = vmul.f32 3.8918573e-05, %v733_v6 }
 0x6f2   : > { %v735_v11 = vadd.f32 0.00028619796, %v734_v9  ;;  %v746_v12 = vadd.f32 0.001143296, %v745_v10 }
 0x6f4   : > { %v736_v15 = vmul.f32 %v735_v11, %v733_v6  ;;  %v747_v16 = vmul.f32 %v746_v12, %v733_v6  ;;  %v848_v12 = vpop.permute.xlu1 %847 }
 0x6f6   : > { %v748_v17 = vadd.f32 0.014752088, %v747_v16  ;;  %v737_v18 = vadd.f32 0.0036580483, %v736_v15 }
 0x6f8   : > { %v749_v20 = vmul.f32 %v748_v17, %v733_v6  ;;  %v738_v22 = vmul.f32 %v737_v18, %v733_v6  ;;  %v2256_v17 = vld [vmem:[%s2394_s4 + $0x3] ss:$0 sm:$0xff] }
 0x6fa   : > { %v750_v21 = vadd.f32 0.112945676, %v749_v20  ;;  %v739_v26 = vadd.f32 0.05243302, %v738_v22 }
 0x6fc   : > { %v751_v24 = vmul.f32 %v750_v21, %v733_v6  ;;  %v740_v30 = vmul.f32 %v739_v26, %v733_v6 }
 0x6fe   : > { %v752_v25 = vadd.f32 0.4994258, %v751_v24  ;;  %v741_v31 = vadd.f32 0.18741608, %v740_v30 }
 0x700   : > { %v753_v28 = vmul.f32 %v752_v25, %v733_v6  ;;  %v742_v34 = vmul.f32 %v741_v31, %v733_v6 }
 0x702   : > { %v754_v29 = vadd.f32 1.0, %v753_v28  ;;  %v743_v37 = vadd.f32 1.1283791, %v742_v34 }
 0x704   : > { %1807 = vrcp.f32 %v754_v29  ;;  %v766_v36 = vand.u32 2147483648, %v754_v29  ;;  %v764_v39 = vand.u32 2147483647, %v754_v29  ;;  %vm760_vm15 = vweird.f32 %v754_v29 }
 0x705   : > { %v744_v42 = vmul.f32 %v743_v37, %v731_v4 }
 0x706   : > { %v767_v41 = vor.u32 1.1754944e-38, %v766_v36  ;;  %vm765_vm2 = vcmp.eq.f32.partialorder %v764_v39, 8.507059e+37 }
 0x70a   : > { %v1808_v32 = vpop.eup %1807 }
 0x70b   : > { %v756_v35 = vmul.f32 %v1808_v32, %v754_v29  ;;  %vm761_vm14 = vweird.f32 %v1808_v32 }
 0x70c   : > { %vm762_vm0 = vmor %vm760_vm15, %vm761_vm14 }
 0x70d   : > { %v757_v56 = vsub.f32 1.0, %v756_v35 }
 0x70f   : > { %v758_v38 = vmul.f32 %v1808_v32, %v757_v56 }
 0x711   : > { %v759_v40 = vadd.f32 %v1808_v32, %v758_v38 }
 0x713   : > { %v763_v43 = vsel %vm762_vm0, %v1808_v32, %v759_v40 }
 0x714   : > { %v768_v44 = vsel %vm765_vm2, %v767_v41, %v763_v43 }
 0x715   : > { %v769_v45 = vmul.f32 %v768_v44, %v744_v42 }
 0x717   : > { %v1589_v46 = vclamps-f32 %v769_v45, 1.0 }
 0x719   : > { %v772_v47 = vadd.f32 1.0, %v1589_v46 }
 0x71b   : > { %v773_v48 = vmul.f32 %v772_v47, %v730_v54 }
 0x71d   : > { %v774_v49 = vpack.c.bf16 %v773_v48, %v773_v48 }
 0x71f   : > { %1606 = vmatmul.msk.bf16.vlgmr.msra.gmra.mxu3 %vm803_vm3, %v774_v49 }
 0x7a2   : > { %v816_v50 = vpop.f32.mrf.mxu3 }
 0x7a3   : > { %v817_v51 = vadd.f32 %v1781_v27, %v816_v50 }
 0x7a5   : > { %v820_v52 = vadd.f32 %v817_v51, %v2232_v0 }
 0x7a7   : > { %v821_v53 = vsel %vm284_vm1, %v820_v52, 0.0 }
 0x7a8   : > { %822 = vadd.xlane.f32.xlu2 %v821_v53 }
 0x7aa   : > { %v818_v55 = vpop.f32.mrf.mxu3 }
 0x81b   : > { %v823_v57 = vpop.xlane.xlu2 %822 }
 0x81c   : > { %v824_v58 = vmul.f32 %v823_v57, %v2138_v33 }
 0x81e   : > { %v825_v59 = vsub.f32 %v820_v52, %v824_v58 }
 0x820   : > { %v826_v60 = vmul.f32 %v825_v59, %v825_v59 }
 0x822   : > { %v827_v62 = vsel %vm284_vm1, %v826_v60, 0.0 }
 0x823   : > { %828 = vadd.xlane.f32.xlu0 %v827_v62 }
 0x837   : > { %843 = vrot.lane.b32.xlu0 %v1781_v27, %s1953_s8 }
 0x896   : > { %v829_v1 = vpop.xlane.xlu0 %828 }
 0x897   : > { %v830_v0 = vmul.f32 %v829_v1, %v2138_v33 }
 0x899   : > { %v831_v2 = vadd.f32 1e-12, %v830_v0 }
 0x89b   : > { %1809 = vrsqrt.f32 %v831_v2  ;;  %vm838_vm5 = vweird.f32 %v831_v2 }
 0x8a1   : > { %v1810_v3 = vpop.eup %1809 }
 0x8a2   : > { %v833_v4 = vmul.f32 %v1810_v3, %v831_v2  ;;  %vm839_vm4 = vweird.f32 %v1810_v3 }
 0x8a3   : > { %vm840_vm7 = vmor %vm838_vm5, %vm839_vm4 }
 0x8a4   : > { %v834_v5 = vmul.f32 %v1810_v3, %v833_v4 }
 0x8a6   : > { %v835_v6 = vmul.f32 0.5, %v834_v5 }
 0x8a8   : > { %v836_v7 = vsub.f32 1.5, %v835_v6 }
 0x8a9   : > { %v844_v10 = vpop.permute.xlu0 %843 }
 0x8aa   : > { %v837_v8 = vmul.f32 %v1810_v3, %v836_v7 }
 0x8ac   : > { %v841_v9 = vsel %vm840_vm7, %v1810_v3, %v837_v8 }
 0x8ad   : > { %v842_v11 = vmul.f32 %v841_v9, %v825_v59 }
 0x8af   : > { %v846_v14 = vmul.f32 %v844_v10, %v842_v11 }
 0x8b1   : > { %v2248_v15 = vadd.f32 %v848_v12, %v846_v14 }
 0x8b3   : > { %v856_v16 = vpack.c.bf16 %v2248_v15, %v2248_v15 }
 0x8b5   : > { %1616 = vmatmul.msk.bf16.vlgmr.msrb.gmra.mxu0 %vm284_vm1, %v856_v16 }
 0x932   : > { %v886_v18 = vpop.f32.mrf.mxu0 }
 0x933   : > { %v887_v19 = vadd.f32 %v2256_v17, %v886_v18 }
 0x935   : > { %v890_v20 = vpack.c.bf16 %v887_v19, %v887_v19 }
 0x937   : > { %v892_v21 = vunpack.c.l.b16 %v890_v20 }
 0x939   : > { %v2259_v22 = vpack.c.b16 %v892_v21, %v892_v21 }
 0x93a   : > { %v888_v23 = vpop.f32.mrf.mxu0 }
 0x93b   : > { %981 = vrot.lane.b32.xlu2 %v2259_v22, %s1958_s12  ;;  %952 = vrot.lane.b32.xlu0 %v2259_v22, %s1955_s10 }
 0x93c   : > { %923 = vrot.lane.b32.xlu1 %v2259_v22, %s1956_s3 }
 0x943   : > { %950 = vrot.lane.b32.xlu0 %v2259_v22, %s1954_s11 }
 0x944   : > { %921 = vrot.lane.b32.xlu1 %v2259_v22, %s1957_s26 }
 0x94b   : > { %894 = vrot.lane.b32.xlu0 %v2259_v22, %s1953_s8 }
 0x94c   : > { %979 = vrot.lane.b32.xlu1 %v2259_v22, %s1959_s14 }
 0x995   : > { %v982_v24 = vpop.permute.xlu2 %981 }
 0x996   : > { %v987_v25 = vsel %vm368_vm6, %v982_v24, 0 }
 0x997   : > { %996 = vmatpush.bf16.xpose.msra.mxu0 %v987_v25 }
 0x9ad   : > { %v953_v26 = vpop.permute.xlu0 %952 }
 0x9ae   : > { %v958_v27 = vsel %vm368_vm6, %v953_v26, 0  ;;  %v924_v28 = vpop.permute.xlu1 %923 }
 0x9af   : > { %v929_v29 = vsel %vm368_vm6, %v924_v28, 0  ;;  %967 = vmatpush.bf16.xpose.msrb.mxu3 %v958_v27 }
 0x9b0   : > { %938 = vmatpush.bf16.xpose.msrb.mxu2 %v929_v29 }
 0x9b5   : > { %v951_v30 = vpop.permute.xlu0 %950 }
 0x9b6   : > { %v922_v31 = vpop.permute.xlu1 %921  ;;  %1619 = vmatmul.msk.bf16.vlgmr.msrb.gmra.mxu3 %vm368_vm6, %v951_v30 }
 0x9b7   : > { %1618 = vmatmul.msk.bf16.vlgmr.msrb.gmra.mxu2 %vm368_vm6, %v922_v31 }
 0x9bd   : > { %v895_v32 = vpop.permute.xlu0 %894 }
 0x9be   : > { %v900_v34 = vsel %vm368_vm6, %v895_v32, 0  ;;  %v980_v35 = vpop.permute.xlu1 %979 }
 0x9bf   : > { %1620 = vmatmul.msk.bf16.vlgmr.msra.gmra.mxu0 %vm368_vm6, %v980_v35  ;;  %909 = vmatpush.bf16.xpose.msrb.mxu1 %v900_v34 }
 0x9c6   : > { %1617 = vmatmul.msk.bf16.vlgmr.msrb.gmra.mxu1 %vm368_vm6, %v890_v20 }
 0xa39   : > { %v969_v56 = vpop.f32.mrf.mxu3 }
 0xa3a   : > { %v940_v36 = vpop.f32.mrf.mxu2  ;;  %v973_v37 = vmul.f32 0.35355338, %v969_v56 }
 0xa3b   : > { %v944_v38 = vmul.f32 0.35355338, %v940_v36 }
 0xa3c   : > { %v998_v39 = vpop.f32.mrf.mxu0  ;;  %v974_v40 = vadd.f32 %v973_v37, %v2183_v13 }
 0xa3d   : > { %v1002_v41 = vmul.f32 0.35355338, %v998_v39  ;;  %v945_v42 = vadd.f32 %v944_v38, %v2183_v13 }
 0xa3e   : > { %v975_v43 = vsel %vm368_vm6, %v974_v40, -inf }
 0xa3f   : > { %976 = vmax.xlane.f32.xlu0 %v975_v43  ;;  %v946_v44 = vsel %vm368_vm6, %v945_v42, -inf  ;;  %v1003_v45 = vadd.f32 %v1002_v41, %v2183_v13 }
 0xa40   : > { %947 = vmax.xlane.f32.xlu1 %v946_v44 }
 0xa41   : > { %v971_v46 = vpop.f32.mrf.mxu3  ;;  %v1004_v54 = vsel %vm368_vm6, %v1003_v45, -inf }
 0xa42   : > { %v942_v47 = vpop.f32.mrf.mxu2  ;;  %1005 = vmax.xlane.f32.xlu2 %v1004_v54  ;;  %v1697_v46 = vld [vmem:[#allocation5 + $0x68] sm:$0xff]  ;;  %v1696_v54 = vld [vmem:[#allocation5 + $0x60] sm:$0xff] }
 0xa43   : > { %v911_v48 = vpop.f32.mrf.mxu1 }
 0xa44   : > { %v915_v49 = vmul.f32 0.35355338, %v911_v48  ;;  %v1000_v50 = vpop.f32.mrf.mxu0 }
 0xa46   : > { %v916_v51 = vadd.f32 %v915_v49, %v2183_v13 }
 0xa48   : > { %v917_v52 = vsel %vm368_vm6, %v916_v51, -inf }
 0xa49   : > { %918 = vmax.xlane.f32.xlu1 %v917_v52 }
 0xa4b   : > { %v913_v53 = vpop.f32.mrf.mxu1 }
 0xa5a   : > { %1059 = vrot.lane.b32.xlu2 %v2259_v22, %s1963_s30 }
 0xab2   : > { %v977_v55 = vpop.xlane.xlu0 %976 }
 0xab3   : > { %v978_v57 = vsub.f32 %v974_v40, %v977_v55  ;;  %v948_v58 = vpop.xlane.xlu1 %947 }
 0xab4   : > { %v949_v63 = vsub.f32 %v945_v42, %v948_v58 }
 0xab5   : > { %v1012_v59 = vmul.f32 1.442695, %v978_v57  ;;  %v1006_v60 = vpop.xlane.xlu2 %1005 }
 0xab6   : > { %v1007_v62 = vsub.f32 %v1003_v45, %v1006_v60  ;;  %v1010_v1 = vmul.f32 1.442695, %v949_v63 }
 0xab7   : > { %1811 = vpow2.f32 %v1012_v59 }
 0xab8   : > { %v1014_v61 = vmul.f32 1.442695, %v1007_v62  ;;  %v1783_v62 = vld [vmem:[%s2394_s4 + $0x4] ss:$0 sm:$0xff] }
 0xaba   : > { %1813 = vpow2.f32 %v1014_v61 }
 0xabb   : > { %1815 = vpow2.f32 %v1010_v1 }
 0xabc   : > { %v919_v0 = vpop.xlane.xlu1 %918 }
 0xabd   : > { %v1812_v13 = vpop.eup %1811  ;;  %v1060_v2 = vpop.permute.xlu2 %1059  ;;  %v920_v3 = vsub.f32 %v916_v51, %v919_v0 }
 0xabe   : > { %v1065_v4 = vsel %vm518_vm8, %v1060_v2, 0  ;;  %v1022_v5 = vsel %vm368_vm6, %v1812_v13, 0.0  ;;  %v1698_v2 = vld [vmem:[#allocation5 + $0x70] sm:$0xff] }
 0xabf   : > { %v1008_v6 = vmul.f32 1.442695, %v920_v3  ;;  %1074 = vmatpush.bf16.msra.mxu2 %v1065_v4  ;;  %1023 = vadd.xlane.f32.xlu1 %v1022_v5 }
 0xac0   : > { %v1814_v7 = vpop.eup %1813 }
 0xac1   : > { %1817 = vpow2.f32 %v1008_v6  ;;  %v1025_v8 = vsel %vm368_vm6, %v1814_v7, 0.0  ;;  %v1816_v9 = vpop.eup %1815 }
 0xac2   : > { %1026 = vadd.xlane.f32.xlu0 %v1025_v8  ;;  %v1019_v12 = vsel %vm368_vm6, %v1816_v9, 0.0 }
 0xac7   : > { %v1818_v10 = vpop.eup %1817 }
 0xac8   : > { %v1016_v11 = vsel %vm368_vm6, %v1818_v10, 0.0 }
 0xac9   : > { %1017 = vadd.xlane.f32.xlu2 %v1016_v11 }
 0xaca   : > { %1020 = vadd.xlane.f32.xlu0 %v1019_v12 }
 0xad8   : > { %1081 = vrot.lane.b32.xlu1 %v2259_v22, %s1961_s24 }
 0xade   : > { %1103 = vrot.lane.b32.xlu0 %v2259_v22, %s1962_s9  ;;  %s210_s9 = sand.u32 1, %s1938_s23  }
 0xadf   : > { %s1454_s13 = scalar_lea.sflag [#allocation7], %s210_s9 }
 0xae1   : > { %1203 = vrot.lane.b32.xlu2 %v1783_v62, %s1953_s8 }
 0xae6   : > { %1037 = vrot.lane.b32.xlu0 %v2259_v22, %s1964_s19 }
 0xb32   : > { %v1024_v16 = vpop.xlane.xlu1 %1023 }
 0xb35   : > { %v1027_v14 = vpop.xlane.xlu0 %1026 }
 0xb3c   : > { %v1018_v26 = vpop.xlane.xlu2 %1017 }
 0xb3d   : > { %v1021_v18 = vpop.xlane.xlu0 %1020 }
 0xb3e   : > { %1819 = vrcp.f32 %v1021_v18 }
 0xb3f   : > { %1821 = vrcp.f32 %v1024_v16 }
 0xb40   : > { %1823 = vrcp.f32 %v1027_v14 }
 0xb41   : > { %1825 = vrcp.f32 %v1018_v26 }
 0xb44   : > { %v1820_v19 = vpop.eup %1819  ;;  %v1204_v16 = vpop.permute.xlu2 %1203 }
 0xb45   : > { %v1033_v20 = vmul.f32 %v1820_v19, %v1816_v9  ;;  %v1822_v21 = vpop.eup %1821 }
 0xb46   : > { %v1034_v24 = vmul.f32 %v1822_v21, %v1812_v13  ;;  %v1824_v28 = vpop.eup %1823 }
 0xb47   : > { %v1058_v23 = vpack.c.bf16 %v1033_v20, %v1033_v20  ;;  %v1035_v29 = vmul.f32 %v1824_v28, %v1814_v7  ;;  %v1826_v34 = vpop.eup %1825 }
 0xb48   : > { %v1080_v22 = vpack.c.bf16 %v1034_v24, %v1034_v24  ;;  %v1032_v35 = vmul.f32 %v1826_v34, %v1818_v10  ;;  %v1702_v34 = vld [vmem:[#allocation5 + $0x90] sm:$0xff] }
 0xb49   : > { %1622 = vmatmul.msk.bf16.vlgmr.msra.gmra.mxu2 %vm368_vm6, %v1058_v23  ;;  %v1102_v32 = vpack.c.bf16 %v1035_v29, %v1035_v29 }
 0xb4a   : > { %v1082_v25 = vpop.permute.xlu1 %1081  ;;  %v1036_v37 = vpack.c.bf16 %v1032_v35, %v1032_v35 }
 0xb4b   : > { %v1087_v27 = vsel %vm518_vm8, %v1082_v25, 0 }
 0xb4c   : > { %1096 = vmatpush.bf16.msra.mxu3 %v1087_v27 }
 0xb4f   : > { %1623 = vmatmul.msk.bf16.vlgmr.msra.gmra.mxu3 %vm368_vm6, %v1080_v22  ;;  %v1703_v22 = vld [vmem:[#allocation5 + $0x98] sm:$0xff] }
 0xb50   : > { %v1104_v30 = vpop.permute.xlu0 %1103  ;;  %1331 = vmatpush.bf16.msrb.mxu3 %v1703_v22 }
 0xb51   : > { %v1109_v31 = vsel %vm518_vm8, %v1104_v30, 0 }
 0xb52   : > { %1118 = vmatpush.bf16.msrb.mxu0 %v1109_v31 }
 0xb54   : > { %1332 = vmatpush.bf16.msrb.mxu3 %v1702_v34 }
 0xb55   : > { %1624 = vmatmul.msk.bf16.vlgmr.msrb.gmra.mxu0 %vm368_vm6, %v1102_v32 }
 0xb58   : > { %v1038_v56 = vpop.permute.xlu0 %1037 }
 0xb59   : > { %v1043_v36 = vsel %vm518_vm8, %v1038_v56, 0 }
 0xb5a   : > { %1052 = vmatpush.bf16.msra.mxu1 %v1043_v36 }
 0xb5d   : > { %1621 = vmatmul.msk.bf16.vlgmr.msra.gmra.mxu1 %vm368_vm6, %v1036_v37 }
 0xb5e   : > { %1168 = vmatpush.bf16.msrb.mxu1 %v1697_v46  ;;  %v1784_v46 = vld [vmem:[%s2394_s4 + $0x5] ss:$0 sm:$0xff] }
 0xb62   : > { %1169 = vmatpush.bf16.msrb.mxu1 %v1696_v54 }
 0xbcc   : > { %v1076_v38 = vpop.f32.mrf.mxu2 }
 0xbcd   : > { %1125 = vrot.lane.b32.xlu1 %v1076_v38, %s1965_s21  ;;  %v1701_v38 = vld [vmem:[#allocation5 + $0x88] sm:$0xff]  ;;  %s1462_s21 = scalar_lea.hbm %s2395_s5, %s2023_s0 }
 0xbce   : > { %1333 = vmatpush.bf16.msrb.mxu3 %v1701_v38 }
 0xbd2   : > { %v1120_v39 = vpop.f32.mrf.mxu0  ;;  %v1098_v40 = vpop.f32.mrf.mxu3 }
 0xbd3   : > { %1129 = vrot.lane.b32.xlu0 %v1098_v40, %s1966_s18  ;;  %s211_s18 = scalar_lea.vmem [#allocation8], %s210_s9 }
 0xbd4   : > { %v1078_v41 = vpop.f32.mrf.mxu2 }
 0xbd5   : > { %1133 = vrot.lane.b32.xlu1 %v1120_v39, %s1967_s28  ;;  %s1464_s28 = sshll.u32 %s211_s18, 4  ;;  %s1465_s28 = int_to_ptr.vmem [resolvable:$true] %s1464_s28 }
 0xbda   : > { %v1054_v42 = vpop.f32.mrf.mxu1  ;;  %v1122_v43 = vpop.f32.mrf.mxu0 }
 0xbdb   : > { %v1100_v44 = vpop.f32.mrf.mxu3  ;;  %1156 = vrot.lane.b32.xlu0 %v2256_v17, %s1968_s20 }
 0xbe2   : > { %v1056_v45 = vpop.f32.mrf.mxu1 }
 0xc3f   : > { %v1126_v47 = vpop.permute.xlu1 %1125 }
 0xc40   : > { %v1136_v48 = vsel %vm368_vm6, %v1054_v42, %v1126_v47  ;;  %v1700_v42 = vld [vmem:[#allocation5 + $0x80] sm:$0xff] }
 0xc41   : > { %1334 = vmatpush.bf16.msrb.mxu3 %v1700_v42 }
 0xc45   : > { %v1130_v49 = vpop.permute.xlu0 %1129 }
 0xc46   : > { %v1137_v50 = vsel %vm614_vm9, %v1136_v48, %v1130_v49 }
 0xc47   : > { %v1134_v51 = vpop.permute.xlu1 %1133 }
 0xc48   : > { %v1138_v52 = vsel %vm616_vm10, %v1137_v50, %v1134_v51 }
 0xc49   : > { %v1139_v53 = vpack.c.bf16 %v1138_v52, %v1138_v52 }
 0xc4b   : > { %1633 = vmatmul.msk.bf16.vlgmr.msrb.gmra.mxu1 %vm284_vm1, %v1139_v53 }
 0xc4d   : > { %v1157_v55 = vpop.permute.xlu0 %1156 }
 0xcc8   : > { %v1171_v57 = vpop.f32.mrf.mxu1 }
 0xcc9   : > { %v1172_v17 = vadd.f32 %v1171_v57, %v1157_v55 }
 0xccb   : > { %v1175_v58 = vadd.f32 %v1172_v17, %v2248_v15  ;;  %v1699_v15 = vld [vmem:[#allocation5 + $0x78] sm:$0xff] }
 0xccc   : > { %1244 = vmatpush.bf16.msrb.mxu2 %v1699_v15 }
 0xccd   : > { %v1177_v59 = vsel %vm284_vm1, %v1175_v58, 0.0 }
 0xcce   : > { %1178 = vadd.xlane.f32.xlu1 %v1177_v59 }
 0xcd0   : > { %v1173_v60 = vpop.f32.mrf.mxu1  ;;  %1245 = vmatpush.bf16.msrb.mxu2 %v1698_v2 }
 0xce7   : > { %1232 = vrot.lane.b32.xlu1 %v1783_v62, %s1964_s19 }
 0xcef   : > { %1367 = vrot.lane.b32.xlu1 %v1784_v46, %s1964_s19 }
 0xd41   : > { %v1179_v63 = vpop.xlane.xlu1 %1178 }
 0xd42   : > { %v1180_v61 = vmul.f32 %v1179_v63, %v2138_v33 }
 0xd44   : > { %v1181_v1 = vsub.f32 %v1175_v58, %v1180_v61 }
 0xd46   : > { %v1182_v0 = vmul.f32 %v1181_v1, %v1181_v1 }
 0xd48   : > { %v1183_v13 = vsel %vm284_vm1, %v1182_v0, 0.0 }
 0xd49   : > { %1184 = vadd.xlane.f32.xlu0 %v1183_v13 }
 0xd59   : > { %v1233_v21 = vpop.permute.xlu1 %1232 }
 0xdbc   : > { %v1185_v3 = vpop.xlane.xlu0 %1184 }
 0xdbd   : > { %v1186_v4 = vmul.f32 %v1185_v3, %v2138_v33 }
 0xdbf   : > { %v1187_v5 = vadd.f32 1e-12, %v1186_v4 }
 0xdc1   : > { %1827 = vrsqrt.f32 %v1187_v5  ;;  %vm1194_vm8 = vweird.f32 %v1187_v5 }
 0xdc7   : > { %v1828_v6 = vpop.eup %1827 }
 0xdc8   : > { %v1189_v7 = vmul.f32 %v1828_v6, %v1187_v5  ;;  %vm1195_vm6 = vweird.f32 %v1828_v6 }
 0xdc9   : > { %vm1196_vm9 = vmor %vm1194_vm8, %vm1195_vm6 }
 0xdca   : > { %v1190_v8 = vmul.f32 %v1828_v6, %v1189_v7 }
 0xdcc   : > { %v1191_v9 = vmul.f32 0.5, %v1190_v8 }
 0xdce   : > { %v1192_v10 = vsub.f32 1.5, %v1191_v9 }
 0xdd0   : > { %v1193_v11 = vmul.f32 %v1828_v6, %v1192_v10 }
 0xdd2   : > { %v1197_v12 = vsel %vm1196_vm9, %v1828_v6, %v1193_v11 }
 0xdd3   : > { %v1198_v14 = vmul.f32 %v1197_v12, %v1181_v1 }
 0xdd5   : > { %v1202_v18 = vmul.f32 %v1783_v62, %v1198_v14 }
 0xdd7   : > { %v2330_v19 = vadd.f32 %v1204_v16, %v1202_v18  ;;  %v1835_v16 = vld [vmem:[%s2394_s4 + $0x6] ss:$0 sm:$0xff]  ;;  %v1705_v18 = vld [vmem:[#allocation5 + $0xa8] sm:$0xff] }
 0xdd8   : > { %1401 = vmatpush.bf16.msra.mxu0 %v1705_v18 }
 0xdd9   : > { %v1219_v20 = vpack.c.bf16 %v2330_v19, %v2330_v19 }
 0xddb   : > { %1643 = vmatmul.msk.bf16.vlgmr.msrb.gmra.mxu2 %vm284_vm1, %v1219_v20 }
 0xe5e   : > { %v1247_v23 = vpop.f32.mrf.mxu2 }
 0xe5f   : > { %v1248_v24 = vadd.f32 %v1247_v23, %v1233_v21 }
 0xe61   : > { %v1252_v25 = vmul.f32 0.70710677, %v1248_v24  ;;  %v1251_v13 = vmul.f32 0.5, %v1248_v24 }
 0xe63   : > { %v1253_v26 = vmul.f32 %v1252_v25, %v1252_v25 }
 0xe65   : > { %v1254_v27 = vmin.f32 %v1253_v26, 16.0 }
 0xe66   : > { %v1249_v28 = vpop.f32.mrf.mxu2 }
 0xe67   : > { %v1255_v29 = vmul.f32 2.1237322e-06, %v1254_v27  ;;  %v1266_v30 = vmul.f32 3.8918573e-05, %v1254_v27 }
 0xe69   : > { %v1256_v31 = vadd.f32 0.00028619796, %v1255_v29  ;;  %v1267_v32 = vadd.f32 0.001143296, %v1266_v30 }
 0xe6b   : > { %v1257_v35 = vmul.f32 %v1256_v31, %v1254_v27  ;;  %v1268_v56 = vmul.f32 %v1267_v32, %v1254_v27  ;;  %v1368_v32 = vpop.permute.xlu1 %1367 }
 0xe6d   : > { %v1269_v36 = vadd.f32 0.014752088, %v1268_v56  ;;  %v1258_v37 = vadd.f32 0.0036580483, %v1257_v35 }
 0xe6f   : > { %v1270_v39 = vmul.f32 %v1269_v36, %v1254_v27  ;;  %v1259_v41 = vmul.f32 %v1258_v37, %v1254_v27  ;;  %v1706_v36 = vld [vmem:[#allocation5 + $0xb0] sm:$0xff]  ;;  %v1672_v37 = vld [vmem:[%s2394_s4 + $0x6] sm:$0x3] }
 0xe70   : > { %v1428_v38 = vperm.slane %v1672_v37, 0 }
 0xe71   : > { %v1271_v40 = vadd.f32 0.112945676, %v1270_v39  ;;  %v1260_v45 = vadd.f32 0.05243302, %v1259_v41  ;;  %v1429_v39 = vperm.slane %v1672_v37, 1 }
 0xe72   : > { %1430 = vrot.lane.b32.xlu1 %v1428_v38, %s1968_s20 }
 0xe73   : > { %v1272_v43 = vmul.f32 %v1271_v40, %v1254_v27  ;;  %v1261_v48 = vmul.f32 %v1260_v45, %v1254_v27 }
 0xe75   : > { %v1273_v44 = vadd.f32 0.4994258, %v1272_v43  ;;  %v1262_v49 = vadd.f32 0.18741608, %v1261_v48 }
 0xe77   : > { %v1274_v54 = vmul.f32 %v1273_v44, %v1254_v27  ;;  %v1263_v51 = vmul.f32 %v1262_v49, %v1254_v27 }
 0xe79   : > { %v1275_v47 = vadd.f32 1.0, %v1274_v54  ;;  %v1264_v57 = vadd.f32 1.1283791, %v1263_v51 }
 0xe7b   : > { %1829 = vrcp.f32 %v1275_v47  ;;  %v1287_v55 = vand.u32 2147483648, %v1275_v47  ;;  %v1285_v58 = vand.u32 2147483647, %v1275_v47  ;;  %vm1281_vm11 = vweird.f32 %v1275_v47 }
 0xe7c   : > { %v1265_v62 = vmul.f32 %v1264_v57, %v1252_v25 }
 0xe7d   : > { %v1288_v60 = vor.u32 1.1754944e-38, %v1287_v55  ;;  %vm1286_vm13 = vcmp.eq.f32.partialorder %v1285_v58, 8.507059e+37 }
 0xe81   : > { %v1830_v50 = vpop.eup %1829 }
 0xe82   : > { %v1277_v52 = vmul.f32 %v1830_v50, %v1275_v47  ;;  %vm1282_vm10 = vweird.f32 %v1830_v50 }
 0xe83   : > { %vm1283_vm12 = vmor %vm1281_vm11, %vm1282_vm10 }
 0xe84   : > { %v1278_v53 = vsub.f32 1.0, %v1277_v52 }
 0xe86   : > { %v1279_v17 = vmul.f32 %v1830_v50, %v1278_v53 }
 0xe88   : > { %v1280_v59 = vadd.f32 %v1830_v50, %v1279_v17 }
 0xe8a   : > { %v1284_v63 = vsel %vm1283_vm12, %v1830_v50, %v1280_v59 }
 0xe8b   : > { %v1289_v61 = vsel %vm1286_vm13, %v1288_v60, %v1284_v63 }
 0xe8c   : > { %v1290_v1 = vmul.f32 %v1289_v61, %v1265_v62 }
 0xe8e   : > { %v1644_v0 = vclamps-f32 %v1290_v1, 1.0 }
 0xe90   : > { %v1293_v15 = vadd.f32 1.0, %v1644_v0 }
 0xe92   : > { %v1294_v2 = vmul.f32 %v1293_v15, %v1251_v13 }
 0xe94   : > { %v1295_v3 = vpack.c.bf16 %v1294_v2, %v1294_v2 }
 0xe96   : > { %1662 = vmatmul.msk.bf16.vlgmr.msrb.gmra.mxu3 %vm803_vm3, %v1295_v3 }
 0xee4   : > { %v1431_v54 = vpop.permute.xlu1 %1430 }
 0xf19   : > { %v1336_v4 = vpop.f32.mrf.mxu3 }
 0xf1a   : > { %v1337_v5 = vadd.f32 %v1784_v46, %v1336_v4 }
 0xf1c   : > { %v1340_v6 = vadd.f32 %v1337_v5, %v2330_v19  ;;  %v1704_v19 = vld [vmem:[#allocation5 + $0xa0] sm:$0xff] }
 0xf1d   : > { %1402 = vmatpush.bf16.msra.mxu0 %v1704_v19 }
 0xf1e   : > { %v1341_v7 = vsel %vm284_vm1, %v1340_v6, 0.0 }
 0xf1f   : > { %1342 = vadd.xlane.f32.xlu2 %v1341_v7 }
 0xf21   : > { %v1338_v8 = vpop.f32.mrf.mxu3 }
 0xf92   : > { %v1343_v9 = vpop.xlane.xlu2 %1342 }
 0xf93   : > { %v1344_v10 = vmul.f32 %v1343_v9, %v2138_v33 }
 0xf95   : > { %v1345_v11 = vsub.f32 %v1340_v6, %v1344_v10 }
 0xf97   : > { %v1346_v12 = vmul.f32 %v1345_v11, %v1345_v11 }
 0xf99   : > { %v1347_v14 = vsel %vm284_vm1, %v1346_v12, 0.0 }
 0xf9a   : > { %1348 = vadd.xlane.f32.xlu0 %v1347_v14 }
 0xfae   : > { %1363 = vrot.lane.b32.xlu0 %v1784_v46, %s1953_s8 }
 0xfb6   : > { %1389 = vrot.lane.b32.xlu0 %v1835_v16, %s1964_s19 }
 0xfbe   : > { %1432 = vrot.lane.b32.xlu0 %v1429_v39, %s1968_s20  ;;  %s1466_s20 = sshll.u32 %s1462_s21, 4  ;;  %s1467_s20 = int_to_ptr.hbm [resolvable:$true] %s1466_s20 }
 0xfbf   : > { %s1892_s15 = sshra.s32 %s1467_s20, 4  ;;  %s1893_s15 = int_to_ptr.hbm [resolvable:$true] %s1892_s15 }
 0xfc0   : > { %s1894_s29 = scalar_lea.hbm %s1893_s15, 1  ;;  %p1899_p3 = scmp.lt.s32.totalorder %s1893_s15, %s2395_s5 }
 0xfc1   : > { %p1895_p0 = scmp.ne.s32.totalorder %s1893_s15, %s1894_s29  ;;  %p1900_p4 = scmp.lt.s32.totalorder %s1898_s16, %s1894_s29 }
 0xfc3   : > { %p1896_p1 = pnand %p1895_p0, %p2040_p5  ;;  %p1901_p7 = por %p1900_p4, %p1899_p3 }
 0xfc5   : > { %p1897_p2 = pneg %p1896_p1 }
 0xfc7   : > { %p1902_p8 = pnand %p1901_p7, %p1897_p2 }
0x100d   : > { %v1349_v20 = vpop.xlane.xlu0 %1348 }
0x100e   : > { %v1350_v21 = vmul.f32 %v1349_v20, %v2138_v33  ;;  %v1707_v33 = vld [vmem:[#allocation5 + $0xb8] sm:$0xff] }
0x100f   : > { %1445 = vmatpush.bf16.msra.mxu1 %v1707_v33 }
0x1010   : > { %v1351_v23 = vadd.f32 1e-12, %v1350_v21 }
0x1012   : > { %1831 = vrsqrt.f32 %v1351_v23  ;;  %vm1358_vm15 = vweird.f32 %v1351_v23 }
0x1013   : > { %1446 = vmatpush.bf16.msra.mxu1 %v1706_v36 }
0x1018   : > { %v1832_v24 = vpop.eup %1831 }
0x1019   : > { %v1353_v25 = vmul.f32 %v1832_v24, %v1351_v23  ;;  %vm1359_vm14 = vweird.f32 %v1832_v24 }
0x101a   : > { %vm1360_vm0 = vmor %vm1358_vm15, %vm1359_vm14 }
0x101b   : > { %v1354_v26 = vmul.f32 %v1832_v24, %v1353_v25 }
0x101d   : > { %v1355_v27 = vmul.f32 0.5, %v1354_v26 }
0x101f   : > { %v1356_v28 = vsub.f32 1.5, %v1355_v27 }
0x1020   : > { %v1364_v30 = vpop.permute.xlu0 %1363 }
0x1021   : > { %v1357_v22 = vmul.f32 %v1832_v24, %v1356_v28 }
0x1023   : > { %v1361_v29 = vsel %vm1360_vm0, %v1832_v24, %v1357_v22 }
0x1024   : > { %v1362_v31 = vmul.f32 %v1361_v29, %v1345_v11 }
0x1026   : > { %v1366_v34 = vmul.f32 %v1364_v30, %v1362_v31 }
0x1028   : > { %v1370_v35 = vadd.f32 %v1368_v32, %v1366_v34  ;;  %v1390_v40 = vpop.permute.xlu0 %1389 }
0x102a   : > { %v1376_v56 = vpack.c.bf16 %v1370_v35, %v1370_v35 }
0x102c   : > { %1671 = vmatmul.msk.bf16.vlgmr.msra.gmra.mxu0 %vm284_vm1, %v1376_v56 }
0x1030   : > { %v1433_v46 = vpop.permute.xlu0 %1432 }
0x1031   : > { %v1434_v47 = vsel %vm284_vm1, %v1431_v54, %v1433_v46 }
0x10a9   : > { %v1404_v41 = vpop.f32.mrf.mxu0 }
0x10aa   : > { %v1405_v42 = vadd.f32 %v1404_v41, %v1390_v40 }
0x10ac   : > { %1833 = vtanh.f32 %v1405_v42 }
0x10b1   : > { %v1406_v43 = vpop.f32.mrf.mxu0 }
0x10b2   : > { %v1834_v44 = vpop.eup %1833 }
0x10b3   : > { %v1413_v45 = vpack.c.bf16 %v1834_v44, %v1834_v44 }
0x10b5   : > { %1681 = vmatmul.msk.bf16.vlgmr.msra.gmra.mxu1 %vm284_vm1, %v1413_v45 }
0x1132   : > { %v1448_v48 = vpop.f32.mrf.mxu1 }
0x1133   : > { %v1449_v49 = vadd.f32 %v1448_v48, %v1434_v47 }
0x1135   : > { %1452 = vst [vmem:[%s211_s18] sm:$0x1] %v1449_v49 }
0x1136   : > { %1905 = shalt.err (!%p1902_p8)
}
0x1137   : > { %1712 = dma.vmem_to_hbm [thread:$0]  (%p2040_p5), %s1465_s28, 16, %s1467_s20, %s1454_s13  }
0x113a   : > { %v1450_v50 = vpop.f32.mrf.mxu1 }
0x113b PF: > { %p1724_p9 = scmp.ge.s32.totalorder %s1946_s25, 2  ;;  %s1478_s3 = sand.u32 1, %s1934_s22  }
0x113c   : > { %s1479_s26 = scalar_lea.sflag [#allocation7], %s1478_s3 }
0x113d   : > { %p1719_p10 = pnand %p1724_p9, %p2044_p6 }
0x113f   : > { %p1720_p11 = pneg %p1719_p10 }
0x1141   : > { %1929 = dma.done.wait (%p1720_p11), %s1479_s26, 16  }
0x1142   : > { %1931 = vsyncadd (%p1720_p11), %s1479_s26, 4294967280  ;;  %s2403_s12 = sld [smem:[#allocation12_spill]]  ;;  %p24_p12 = scmp.ge.s32.totalorder %s2027_s27, 4  }
0x1143   : > { %s2404_s24 = sld [smem:[#allocation13_spill]]  ;;  %s2405_s22 = smov %s1938_s23 }
0x1144   : > { %s2407_s25 = smov %s2027_s27  ;;  %26 = sbr.rel (!%p24_p12) target bundleno = 10 (0xa), region = 96 }
0x1148   : > { %s2406_s23 = smov %s2403_s12 }
0x1149   :  { %1484 = vsyncpa [#allocation6], 1 }
0x114a   :  { %1486 = vsyncpa [#allocation6 + $0x1], 1 }
0x114b   :  { %1487 = vsyncpa [#allocation7], 1 }
0x114c   :  { %1489 = vsyncpa [#allocation7 + $0x1], 1 }

</bundles_post_ra>
